<compile_context>
chip_gen: v7x
topology: tpu7x:2x2x1
jax: 0.10.0
libtpu: 0.0.40
codegen_flags: <defaults>
</compile_context>

<pallas_src>
import functools

import jax
import jax.numpy as jnp
from jax import lax
from jax.experimental import pallas as pl
from jax.experimental.pallas import tpu as pltpu


def _topo_sig_kernel(latent_ref, norm_ref, dist_x_ref, mask_x_ref,
                     mask_xtot_ref, out_ref, *, k, match_edges, mu_push):
    N = dist_x_ref.shape[0]
    D = latent_ref.shape[1]
    x = latent_ref[...]                               # (N, D) f32
    inv_norm = 1.0 / norm_ref[0, 0]                   # hoisted scalar reciprocal

    # --- pairwise squared distances via Gram expansion (MXU) -----------------
    g = lax.dot_general(x, x, (((1,), (1,)), ((), ())),
                        preferred_element_type=jnp.float32)        # (N, N)
    xx = x * x
    sq_col = jnp.sum(xx, axis=1, keepdims=True)                    # (N, 1), O(N*D)
    ones_1d = jnp.full((1, D), 1.0, jnp.float32)
    sq_row = lax.dot_general(ones_1d, xx, (((1,), (1,)), ((), ())),
                             preferred_element_type=jnp.float32)   # (1, N), MXU
    d2 = jnp.maximum(sq_col + sq_row - 2.0 * g, 0.0)               # (N, N)
    # Diagonal of d2 is ~0 (fp residual), not exactly 0; it is excluded from
    # the kNN search and hits only zero masks below, so no eye-select needed.
    dist_z = jnp.sqrt(d2) * inv_norm                                # (N, N)

    # --- kNN mask of Z: packed (distance | column) keys, ONE reduce / step ---
    row_i = lax.broadcasted_iota(jnp.int32, (N, N), 0)
    col_j = lax.broadcasted_iota(jnp.int32, (N, N), 1)
    nbits = max(1, (N - 1).bit_length())
    idx_mask = (1 << nbits) - 1
    # +1e-20 keeps every key in the normal f32 range (no denormal/FTZ issues);
    # adding a constant is monotone so the neighbor ordering is preserved.
    bits = pltpu.bitcast(d2 + jnp.float32(1e-20), jnp.int32)
    keyf = pltpu.bitcast((bits & jnp.int32(~idx_mask)) | col_j, jnp.float32)
    keyf = jnp.where(row_i == col_j, jnp.float32(jnp.inf), keyf)    # exclude self

    mask_z = jnp.zeros((N, N), jnp.float32)
    for _ in range(k):                                              # k is tiny/static
        row_min = jnp.min(keyf, axis=1, keepdims=True)              # (N, 1) lane reduce
        win = pltpu.bitcast(row_min, jnp.int32) & jnp.int32(idx_mask)
        sel = col_j == win                                          # exactly one / row
        mask_z = mask_z + sel.astype(jnp.float32)
        keyf = jnp.where(sel, jnp.float32(jnp.inf), keyf)

    # --- symmetric-OR statistics (X side precomputed on the host) ------------
    mask_xtot = mask_xtot_ref[...]                                  # {0,1} f32
    mask_ztot = jnp.maximum(mask_z, mask_z.T)                       # OR for {0,1}
    mask_z_nonmatching = mask_ztot * (1.0 - mask_xtot)              # ztot - xtot == 1

    # --- scalar reductions on the (otherwise idle) MXU ------------------------
    ones_row = jnp.full((1, N), 1.0, jnp.float32)

    def mxu_sum(a):                                                 # (N,N) -> (1,1)
        r = lax.dot_general(ones_row, a, (((1,), (0,)), ((), ())),
                            preferred_element_type=jnp.float32)     # (1, N)
        return jnp.sum(r, axis=1, keepdims=True)                    # cheap lane reduce

    mask_x = mask_x_ref[...]
    dist_x = dist_x_ref[...]
    diff = dist_x - dist_z
    s12 = diff * mask_x
    d12 = mxu_sum(s12 * s12)

    if match_edges == 'push':
        s21 = jnp.maximum(diff * mask_z, 0.0)
        d21 = mxu_sum(s21 * s21)
    elif match_edges == 'push_active':
        s21 = jnp.maximum((jnp.float32(mu_push) * dist_x - dist_z)
                          * mask_z_nonmatching, 0.0)
        d21 = mxu_sum(s21 * s21)
    elif match_edges == 'push2':
        sp = dist_z * (1.0 - mask_x)
        sig_push_sum = mxu_sum(sp * sp)   # mirrors reference; can be 0 -> inf
        s21 = jnp.maximum(diff * mask_z, 0.0)
        d21 = jnp.float32(100000.0) / sig_push_sum + mxu_sum(s21 * s21)
    else:
        # 'symmetric' and 'verification' (and any other value) use the
        # symmetric term, matching the reference control flow.
        # TODO(synk): 'verification' host-side matplotlib/seaborn plotting has
        # no Pallas equivalent (pure visualization).
        s21 = diff * mask_z
        d21 = mxu_sum(s21 * s21)

    nm_count = mxu_sum(mask_z_nonmatching)
    zt_count = mxu_sum(mask_ztot)

    # --- single lane-dense output: [d12, d21, nonmatch, ztot, 0...] ----------
    lane = lax.broadcasted_iota(jnp.int32, (1, 128), 1)
    out = jnp.where(lane == 0, d12, 0.0)
    out = out + jnp.where(lane == 1, d21, 0.0)
    out = out + jnp.where(lane == 2, nm_count, 0.0)
    out = out + jnp.where(lane == 3, zt_count, 0.0)
    out_ref[...] = out


class TopologicalSignatureDistanceWC:
    """JAX/Pallas mirror of the PyTorch TopologicalSignatureDistanceWC.forward."""

    def __init__(self, k, match_edges='symmetric', mu_push=1.0):
        self.k = int(k)
        self.match_edges = match_edges
        self.mu_push = float(mu_push)

    def __call__(self, latent, latent_norm, dist_X, pair_mask_X, labels=None):
        latent = latent.astype(jnp.float32)
        dist_X = dist_X.astype(jnp.float32)
        pair_mask_X = pair_mask_X.astype(jnp.float32)
        N, D = latent.shape
        norm_arr = jnp.asarray(latent_norm, jnp.float32).reshape(1, 1)

        # X-side symmetric-OR mask precomputed outside the kernel: removes one
        # full N x N transpose + logical_or pass from the in-kernel XLU path.
        mx_bool = pair_mask_X != 0
        mask_xtot = jnp.logical_or(mx_bool, mx_bool.T).astype(jnp.float32)

        kernel = functools.partial(_topo_sig_kernel, k=self.k,
                                   match_edges=self.match_edges,
                                   mu_push=self.mu_push)

        # ~12-16 live N x N f32 temporaries + the three N x N inputs; raise the
        # scoped VMEM limit accordingly (default is 16 MiB v5e / 32 MiB v6e+).
        vmem_limit = int(min(100 * 2 ** 20, max(32 * 2 ** 20, 24 * N * N * 4)))

        # Advisory cost hint so XLA schedules neighbouring ops around this
        # custom call sensibly (Gram matmul + ~30 N^2 VPU passes + k reduces).
        cost = pl.CostEstimate(
            flops=int(2 * N * N * D + (30 + 3 * self.k) * N * N),
            transcendentals=int(N * N),
            bytes_accessed=int((3 * N * N + N * D + 128) * 4))

        out = pl.pallas_call(
            kernel,
            out_shape=jax.ShapeDtypeStruct((1, 128), jnp.float32),
            in_specs=[
                pl.BlockSpec(memory_space=pltpu.MemorySpace.VMEM),   # latent
                pl.BlockSpec(memory_space=pltpu.MemorySpace.SMEM),   # latent_norm
                pl.BlockSpec(memory_space=pltpu.MemorySpace.VMEM),   # dist_X
                pl.BlockSpec(memory_space=pltpu.MemorySpace.VMEM),   # pair_mask_X
                pl.BlockSpec(memory_space=pltpu.MemorySpace.VMEM),   # mask_Xtot
            ],
            out_specs=pl.BlockSpec(memory_space=pltpu.MemorySpace.VMEM),
            compiler_params=pltpu.CompilerParams(vmem_limit_bytes=vmem_limit),
            cost_estimate=cost,
        )(latent, norm_arr, dist_X, pair_mask_X, mask_xtot)

        distance1_2 = out[0, 0]
        distance2_1 = out[0, 1]
        non_matching = out[0, 2] / out[0, 3]
        distance = distance1_2 + distance2_1
        components = {
            'metrics.notmatched_pairs_0D': non_matching,
            'metrics.distance1-2': distance1_2,
            'metrics.distance2-1': distance2_1,
        }
        return distance, components


# ----------------------------------------------------------------------------
# Pure-JAX reference (mirrors the PyTorch forward, symmetric mode)
# ----------------------------------------------------------------------------
def _reference_forward(latent, latent_norm, dist_X, pair_mask_X, k):
    diff = latent[:, None, :] - latent[None, :, :]
    dz = jnp.sqrt(jnp.sum(diff * diff, axis=-1)) / latent_norm
    n = dz.shape[0]
    idx = jnp.argsort(dz, axis=1)[:, 1:k + 1]
    mask_z = jnp.zeros_like(dz).at[jnp.arange(n)[:, None], idx].set(1.0)
    mxt = jnp.logical_or(pair_mask_X != 0, pair_mask_X.T != 0).astype(jnp.float32)
    mzt = jnp.logical_or(mask_z != 0, mask_z.T != 0).astype(jnp.float32)
    nonmatch = jnp.sum(((mzt - mxt) == 1).astype(jnp.float32)) / jnp.sum(mzt)
    d12 = jnp.sum(jnp.square((dist_X - dz) * pair_mask_X))
    d21 = jnp.sum(jnp.square((dist_X - dz) * mask_z))
    return d12 + d21, d12, d21, nonmatch


if __name__ == "__main__":
    N, D_LATENT, D_DATA, K = 128, 8, 16, 8

    key = jax.random.PRNGKey(0)
    k_lat, k_dat = jax.random.split(key)
    latent = jax.random.normal(k_lat, (N, D_LATENT), dtype=jnp.float32)
    data = jax.random.normal(k_dat, (N, D_DATA), dtype=jnp.float32)

    # Input-space distance matrix + its kNN pairing mask (witness-complex style).
    dd = data[:, None, :] - data[None, :, :]
    dist_X = jnp.sqrt(jnp.sum(dd * dd, axis=-1))
    dist_X = dist_X / jnp.max(dist_X)
    idx_X = jnp.argsort(dist_X, axis=1)[:, 1:K + 1]
    pair_mask_X = jnp.zeros((N, N), jnp.float32).at[
        jnp.arange(N)[:, None], idx_X].set(1.0)

    latent_norm = jnp.float32(2.5)

    module = TopologicalSignatureDistanceWC(k=K, match_edges='symmetric',
                                            mu_push=1.1)
    distance, components = module(latent, latent_norm, dist_X, pair_mask_X)
    distance = jax.block_until_ready(distance)

    # Sanity check against a plain-JAX reference of the PyTorch semantics.
    ref_dist, ref_d12, ref_d21, ref_nm = _reference_forward(
        latent, latent_norm, dist_X, pair_mask_X, K)
    assert jnp.isfinite(distance), "non-finite distance"
    assert jnp.allclose(distance, ref_dist, rtol=5e-2, atol=1e-3), (
        float(distance), float(ref_dist))
    assert jnp.allclose(components['metrics.distance1-2'], ref_d12,
                        rtol=5e-2, atol=1e-3)
    assert jnp.allclose(components['metrics.distance2-1'], ref_d21,
                        rtol=5e-2, atol=1e-3)

    print("KERNEL_OK")
</pallas_src>

<mosaic_0001>
module attributes {stable_mosaic.version = 11 : i64} {
  func.func @_topo_sig_kernel(%arg0: memref<128x8xf32, #tpu.memory_space<vmem>>, %arg1: memref<1x1xf32, #tpu.memory_space<smem>>, %arg2: memref<128x128xf32, #tpu.memory_space<vmem>>, %arg3: memref<128x128xf32, #tpu.memory_space<vmem>>, %arg4: memref<128x128xf32, #tpu.memory_space<vmem>>, %arg5: memref<1x128xf32, #tpu.memory_space<vmem>>) attributes {dimension_semantics = [], scalar_prefetch = 0 : i64, scratch_operands = 0 : i64, tpu.core_type = #tpu.core_type<tc>} {
    %c0 = arith.constant 0 : index
    %c0_0 = arith.constant 0 : index
    %0 = vector.load %arg0[%c0, %c0_0] : memref<128x8xf32, #tpu.memory_space<vmem>>, vector<128x8xf32>
    %c0_1 = arith.constant 0 : index
    %c0_2 = arith.constant 0 : index
    %1 = memref.load %arg1[%c0_1, %c0_2] : memref<1x1xf32, #tpu.memory_space<smem>>
    %cst = arith.constant 1.000000e+00 : f32
    %2 = arith.divf %cst, %1 : f32
    %cst_3 = arith.constant dense<0.000000e+00> : vector<128x128xf32>
    %3 = tpu.matmul %0, %0, %cst_3 {dimension_numbers = #tpu.dot_dimension_numbers<[1], [1], [0], [0], [0, 0, 1, 0], [], []>} : vector<128x8xf32>, vector<128x8xf32>, vector<128x128xf32> -> vector<128x128xf32>
    %4 = arith.mulf %0, %0 : vector<128x8xf32>
    %cst_4 = arith.constant dense<0.000000e+00> : vector<128xf32>
    %5 = vector.multi_reduction <add>, %4, %cst_4 [1] : vector<128x8xf32> to vector<128xf32>
    %6 = vector.shape_cast %5 : vector<128xf32> to vector<128x1xf32>
    %cst_5 = arith.constant 1.000000e+00 : f32
    %7 = vector.broadcast %cst_5 : f32 to vector<1x8xf32>
    %cst_6 = arith.constant dense<0.000000e+00> : vector<1x128xf32>
    %8 = tpu.matmul %7, %4, %cst_6 {dimension_numbers = #tpu.dot_dimension_numbers<[1], [1], [0], [0], [0, 0, 1, 0], [], []>} : vector<1x8xf32>, vector<128x8xf32>, vector<1x128xf32> -> vector<1x128xf32>
    %9 = vector.broadcast %6 : vector<128x1xf32> to vector<128x128xf32>
    %10 = vector.broadcast %8 : vector<1x128xf32> to vector<128x128xf32>
    %11 = arith.addf %9, %10 : vector<128x128xf32>
    %cst_7 = arith.constant 2.000000e+00 : f32
    %12 = vector.broadcast %cst_7 : f32 to vector<128x128xf32>
    %13 = arith.mulf %12, %3 : vector<128x128xf32>
    %14 = arith.subf %11, %13 : vector<128x128xf32>
    %cst_8 = arith.constant 0.000000e+00 : f32
    %15 = vector.broadcast %cst_8 : f32 to vector<128x128xf32>
    %16 = arith.maximumf %14, %15 : vector<128x128xf32>
    %17 = math.sqrt %16 : vector<128x128xf32>
    %18 = vector.broadcast %2 : f32 to vector<128x128xf32>
    %19 = arith.mulf %17, %18 : vector<128x128xf32>
    %20 = tpu.iota {dimensions = array<i32: 0>} : vector<128x128xi32>
    %21 = tpu.iota {dimensions = array<i32: 1>} : vector<128x128xi32>
    %cst_9 = arith.constant 9.99999968E-21 : f32
    %22 = vector.broadcast %cst_9 : f32 to vector<128x128xf32>
    %23 = arith.addf %16, %22 : vector<128x128xf32>
    %24 = tpu.bitcast %23 : vector<128x128xf32> -> vector<128x128xi32>
    %c-128_i32 = arith.constant -128 : i32
    %25 = vector.broadcast %c-128_i32 : i32 to vector<128x128xi32>
    %26 = arith.andi %24, %25 : vector<128x128xi32>
    %27 = arith.ori %26, %21 : vector<128x128xi32>
    %28 = tpu.bitcast %27 : vector<128x128xi32> -> vector<128x128xf32>
    %29 = arith.cmpi eq, %20, %21 : vector<128x128xi32>
    %cst_10 = arith.constant 0x7F800000 : f32
    %30 = vector.broadcast %cst_10 : f32 to vector<128x128xf32>
    %31 = arith.select %29, %30, %28 : vector<128x128xi1>, vector<128x128xf32>
    %cst_11 = arith.constant 0.000000e+00 : f32
    %32 = vector.broadcast %cst_11 : f32 to vector<128x128xf32>
    %cst_12 = arith.constant dense<0x7F800000> : vector<128xf32>
    %33 = vector.multi_reduction <minimumf>, %31, %cst_12 [1] : vector<128x128xf32> to vector<128xf32>
    %34 = vector.shape_cast %33 : vector<128xf32> to vector<128x1xf32>
    %35 = tpu.bitcast %34 : vector<128x1xf32> -> vector<128x1xi32>
    %c127_i32 = arith.constant 127 : i32
    %36 = vector.broadcast %c127_i32 : i32 to vector<128x1xi32>
    %37 = arith.andi %35, %36 : vector<128x1xi32>
    %38 = vector.broadcast %37 : vector<128x1xi32> to vector<128x128xi32>
    %39 = arith.cmpi eq, %21, %38 : vector<128x128xi32>
    %40 = arith.extui %39 : vector<128x128xi1> to vector<128x128xi32>
    %41 = arith.sitofp %40 : vector<128x128xi32> to vector<128x128xf32>
    %42 = arith.addf %32, %41 : vector<128x128xf32>
    %cst_13 = arith.constant 0x7F800000 : f32
    %43 = vector.broadcast %cst_13 : f32 to vector<128x128xf32>
    %44 = arith.select %39, %43, %31 : vector<128x128xi1>, vector<128x128xf32>
    %cst_14 = arith.constant dense<0x7F800000> : vector<128xf32>
    %45 = vector.multi_reduction <minimumf>, %44, %cst_14 [1] : vector<128x128xf32> to vector<128xf32>
    %46 = vector.shape_cast %45 : vector<128xf32> to vector<128x1xf32>
    %47 = tpu.bitcast %46 : vector<128x1xf32> -> vector<128x1xi32>
    %c127_i32_15 = arith.constant 127 : i32
    %48 = vector.broadcast %c127_i32_15 : i32 to vector<128x1xi32>
    %49 = arith.andi %47, %48 : vector<128x1xi32>
    %50 = vector.broadcast %49 : vector<128x1xi32> to vector<128x128xi32>
    %51 = arith.cmpi eq, %21, %50 : vector<128x128xi32>
    %52 = arith.extui %51 : vector<128x128xi1> to vector<128x128xi32>
    %53 = arith.sitofp %52 : vector<128x128xi32> to vector<128x128xf32>
    %54 = arith.addf %42, %53 : vector<128x128xf32>
    %cst_16 = arith.constant 0x7F800000 : f32
    %55 = vector.broadcast %cst_16 : f32 to vector<128x128xf32>
    %56 = arith.select %51, %55, %44 : vector<128x128xi1>, vector<128x128xf32>
    %cst_17 = arith.constant dense<0x7F800000> : vector<128xf32>
    %57 = vector.multi_reduction <minimumf>, %56, %cst_17 [1] : vector<128x128xf32> to vector<128xf32>
    %58 = vector.shape_cast %57 : vector<128xf32> to vector<128x1xf32>
    %59 = tpu.bitcast %58 : vector<128x1xf32> -> vector<128x1xi32>
    %c127_i32_18 = arith.constant 127 : i32
    %60 = vector.broadcast %c127_i32_18 : i32 to vector<128x1xi32>
    %61 = arith.andi %59, %60 : vector<128x1xi32>
    %62 = vector.broadcast %61 : vector<128x1xi32> to vector<128x128xi32>
    %63 = arith.cmpi eq, %21, %62 : vector<128x128xi32>
    %64 = arith.extui %63 : vector<128x128xi1> to vector<128x128xi32>
    %65 = arith.sitofp %64 : vector<128x128xi32> to vector<128x128xf32>
    %66 = arith.addf %54, %65 : vector<128x128xf32>
    %cst_19 = arith.constant 0x7F800000 : f32
    %67 = vector.broadcast %cst_19 : f32 to vector<128x128xf32>
    %68 = arith.select %63, %67, %56 : vector<128x128xi1>, vector<128x128xf32>
    %cst_20 = arith.constant dense<0x7F800000> : vector<128xf32>
    %69 = vector.multi_reduction <minimumf>, %68, %cst_20 [1] : vector<128x128xf32> to vector<128xf32>
    %70 = vector.shape_cast %69 : vector<128xf32> to vector<128x1xf32>
    %71 = tpu.bitcast %70 : vector<128x1xf32> -> vector<128x1xi32>
    %c127_i32_21 = arith.constant 127 : i32
    %72 = vector.broadcast %c127_i32_21 : i32 to vector<128x1xi32>
    %73 = arith.andi %71, %72 : vector<128x1xi32>
    %74 = vector.broadcast %73 : vector<128x1xi32> to vector<128x128xi32>
    %75 = arith.cmpi eq, %21, %74 : vector<128x128xi32>
    %76 = arith.extui %75 : vector<128x128xi1> to vector<128x128xi32>
    %77 = arith.sitofp %76 : vector<128x128xi32> to vector<128x128xf32>
    %78 = arith.addf %66, %77 : vector<128x128xf32>
    %cst_22 = arith.constant 0x7F800000 : f32
    %79 = vector.broadcast %cst_22 : f32 to vector<128x128xf32>
    %80 = arith.select %75, %79, %68 : vector<128x128xi1>, vector<128x128xf32>
    %cst_23 = arith.constant dense<0x7F800000> : vector<128xf32>
    %81 = vector.multi_reduction <minimumf>, %80, %cst_23 [1] : vector<128x128xf32> to vector<128xf32>
    %82 = vector.shape_cast %81 : vector<128xf32> to vector<128x1xf32>
    %83 = tpu.bitcast %82 : vector<128x1xf32> -> vector<128x1xi32>
    %c127_i32_24 = arith.constant 127 : i32
    %84 = vector.broadcast %c127_i32_24 : i32 to vector<128x1xi32>
    %85 = arith.andi %83, %84 : vector<128x1xi32>
    %86 = vector.broadcast %85 : vector<128x1xi32> to vector<128x128xi32>
    %87 = arith.cmpi eq, %21, %86 : vector<128x128xi32>
    %88 = arith.extui %87 : vector<128x128xi1> to vector<128x128xi32>
    %89 = arith.sitofp %88 : vector<128x128xi32> to vector<128x128xf32>
    %90 = arith.addf %78, %89 : vector<128x128xf32>
    %cst_25 = arith.constant 0x7F800000 : f32
    %91 = vector.broadcast %cst_25 : f32 to vector<128x128xf32>
    %92 = arith.select %87, %91, %80 : vector<128x128xi1>, vector<128x128xf32>
    %cst_26 = arith.constant dense<0x7F800000> : vector<128xf32>
    %93 = vector.multi_reduction <minimumf>, %92, %cst_26 [1] : vector<128x128xf32> to vector<128xf32>
    %94 = vector.shape_cast %93 : vector<128xf32> to vector<128x1xf32>
    %95 = tpu.bitcast %94 : vector<128x1xf32> -> vector<128x1xi32>
    %c127_i32_27 = arith.constant 127 : i32
    %96 = vector.broadcast %c127_i32_27 : i32 to vector<128x1xi32>
    %97 = arith.andi %95, %96 : vector<128x1xi32>
    %98 = vector.broadcast %97 : vector<128x1xi32> to vector<128x128xi32>
    %99 = arith.cmpi eq, %21, %98 : vector<128x128xi32>
    %100 = arith.extui %99 : vector<128x128xi1> to vector<128x128xi32>
    %101 = arith.sitofp %100 : vector<128x128xi32> to vector<128x128xf32>
    %102 = arith.addf %90, %101 : vector<128x128xf32>
    %cst_28 = arith.constant 0x7F800000 : f32
    %103 = vector.broadcast %cst_28 : f32 to vector<128x128xf32>
    %104 = arith.select %99, %103, %92 : vector<128x128xi1>, vector<128x128xf32>
    %cst_29 = arith.constant dense<0x7F800000> : vector<128xf32>
    %105 = vector.multi_reduction <minimumf>, %104, %cst_29 [1] : vector<128x128xf32> to vector<128xf32>
    %106 = vector.shape_cast %105 : vector<128xf32> to vector<128x1xf32>
    %107 = tpu.bitcast %106 : vector<128x1xf32> -> vector<128x1xi32>
    %c127_i32_30 = arith.constant 127 : i32
    %108 = vector.broadcast %c127_i32_30 : i32 to vector<128x1xi32>
    %109 = arith.andi %107, %108 : vector<128x1xi32>
    %110 = vector.broadcast %109 : vector<128x1xi32> to vector<128x128xi32>
    %111 = arith.cmpi eq, %21, %110 : vector<128x128xi32>
    %112 = arith.extui %111 : vector<128x128xi1> to vector<128x128xi32>
    %113 = arith.sitofp %112 : vector<128x128xi32> to vector<128x128xf32>
    %114 = arith.addf %102, %113 : vector<128x128xf32>
    %cst_31 = arith.constant 0x7F800000 : f32
    %115 = vector.broadcast %cst_31 : f32 to vector<128x128xf32>
    %116 = arith.select %111, %115, %104 : vector<128x128xi1>, vector<128x128xf32>
    %cst_32 = arith.constant dense<0x7F800000> : vector<128xf32>
    %117 = vector.multi_reduction <minimumf>, %116, %cst_32 [1] : vector<128x128xf32> to vector<128xf32>
    %118 = vector.shape_cast %117 : vector<128xf32> to vector<128x1xf32>
    %119 = tpu.bitcast %118 : vector<128x1xf32> -> vector<128x1xi32>
    %c127_i32_33 = arith.constant 127 : i32
    %120 = vector.broadcast %c127_i32_33 : i32 to vector<128x1xi32>
    %121 = arith.andi %119, %120 : vector<128x1xi32>
    %122 = vector.broadcast %121 : vector<128x1xi32> to vector<128x128xi32>
    %123 = arith.cmpi eq, %21, %122 : vector<128x128xi32>
    %124 = arith.extui %123 : vector<128x128xi1> to vector<128x128xi32>
    %125 = arith.sitofp %124 : vector<128x128xi32> to vector<128x128xf32>
    %126 = arith.addf %114, %125 : vector<128x128xf32>
    %c0_34 = arith.constant 0 : index
    %c0_35 = arith.constant 0 : index
    %127 = vector.load %arg4[%c0_34, %c0_35] : memref<128x128xf32, #tpu.memory_space<vmem>>, vector<128x128xf32>
    %128 = tpu.transpose %126, [1, 0] : vector<128x128xf32> -> vector<128x128xf32>
    %129 = arith.maximumf %126, %128 : vector<128x128xf32>
    %cst_36 = arith.constant 1.000000e+00 : f32
    %130 = vector.broadcast %cst_36 : f32 to vector<128x128xf32>
    %131 = arith.subf %130, %127 : vector<128x128xf32>
    %132 = arith.mulf %129, %131 : vector<128x128xf32>
    %cst_37 = arith.constant 1.000000e+00 : f32
    %133 = vector.broadcast %cst_37 : f32 to vector<1x128xf32>
    %c0_38 = arith.constant 0 : index
    %c0_39 = arith.constant 0 : index
    %134 = vector.load %arg3[%c0_38, %c0_39] : memref<128x128xf32, #tpu.memory_space<vmem>>, vector<128x128xf32>
    %c0_40 = arith.constant 0 : index
    %c0_41 = arith.constant 0 : index
    %135 = vector.load %arg2[%c0_40, %c0_41] : memref<128x128xf32, #tpu.memory_space<vmem>>, vector<128x128xf32>
    %136 = arith.subf %135, %19 : vector<128x128xf32>
    %137 = arith.mulf %136, %134 : vector<128x128xf32>
    %138 = arith.mulf %137, %137 : vector<128x128xf32>
    %cst_42 = arith.constant dense<0.000000e+00> : vector<1x128xf32>
    %139 = tpu.matmul %133, %138, %cst_42 {dimension_numbers = #tpu.dot_dimension_numbers<[1], [0], [0], [1], [0, 0, 1, 1], [], []>} : vector<1x128xf32>, vector<128x128xf32>, vector<1x128xf32> -> vector<1x128xf32>
    %cst_43 = arith.constant dense<0.000000e+00> : vector<1xf32>
    %140 = vector.multi_reduction <add>, %139, %cst_43 [1] : vector<1x128xf32> to vector<1xf32>
    %141 = vector.shape_cast %140 : vector<1xf32> to vector<1x1xf32>
    %142 = arith.mulf %136, %126 : vector<128x128xf32>
    %143 = arith.mulf %142, %142 : vector<128x128xf32>
    %cst_44 = arith.constant dense<0.000000e+00> : vector<1x128xf32>
    %144 = tpu.matmul %133, %143, %cst_44 {dimension_numbers = #tpu.dot_dimension_numbers<[1], [0], [0], [1], [0, 0, 1, 1], [], []>} : vector<1x128xf32>, vector<128x128xf32>, vector<1x128xf32> -> vector<1x128xf32>
    %cst_45 = arith.constant dense<0.000000e+00> : vector<1xf32>
    %145 = vector.multi_reduction <add>, %144, %cst_45 [1] : vector<1x128xf32> to vector<1xf32>
    %146 = vector.shape_cast %145 : vector<1xf32> to vector<1x1xf32>
    %cst_46 = arith.constant dense<0.000000e+00> : vector<1x128xf32>
    %147 = tpu.matmul %133, %132, %cst_46 {dimension_numbers = #tpu.dot_dimension_numbers<[1], [0], [0], [1], [0, 0, 1, 1], [], []>} : vector<1x128xf32>, vector<128x128xf32>, vector<1x128xf32> -> vector<1x128xf32>
    %cst_47 = arith.constant dense<0.000000e+00> : vector<1xf32>
    %148 = vector.multi_reduction <add>, %147, %cst_47 [1] : vector<1x128xf32> to vector<1xf32>
    %149 = vector.shape_cast %148 : vector<1xf32> to vector<1x1xf32>
    %cst_48 = arith.constant dense<0.000000e+00> : vector<1x128xf32>
    %150 = tpu.matmul %133, %129, %cst_48 {dimension_numbers = #tpu.dot_dimension_numbers<[1], [0], [0], [1], [0, 0, 1, 1], [], []>} : vector<1x128xf32>, vector<128x128xf32>, vector<1x128xf32> -> vector<1x128xf32>
    %cst_49 = arith.constant dense<0.000000e+00> : vector<1xf32>
    %151 = vector.multi_reduction <add>, %150, %cst_49 [1] : vector<1x128xf32> to vector<1xf32>
    %152 = vector.shape_cast %151 : vector<1xf32> to vector<1x1xf32>
    %153 = tpu.iota {dimensions = array<i32: 1>} : vector<1x128xi32>
    %c0_i32 = arith.constant 0 : i32
    %154 = vector.broadcast %c0_i32 : i32 to vector<1x128xi32>
    %155 = arith.cmpi eq, %153, %154 : vector<1x128xi32>
    %cst_50 = arith.constant 0.000000e+00 : f32
    %156 = vector.shape_cast %141 : vector<1x1xf32> to vector<1x1xf32>
    %157 = vector.broadcast %156 : vector<1x1xf32> to vector<1x128xf32>
    %158 = vector.broadcast %cst_50 : f32 to vector<1x128xf32>
    %159 = arith.select %155, %157, %158 : vector<1x128xi1>, vector<1x128xf32>
    %c1_i32 = arith.constant 1 : i32
    %160 = vector.broadcast %c1_i32 : i32 to vector<1x128xi32>
    %161 = arith.cmpi eq, %153, %160 : vector<1x128xi32>
    %cst_51 = arith.constant 0.000000e+00 : f32
    %162 = vector.shape_cast %146 : vector<1x1xf32> to vector<1x1xf32>
    %163 = vector.broadcast %162 : vector<1x1xf32> to vector<1x128xf32>
    %164 = vector.broadcast %cst_51 : f32 to vector<1x128xf32>
    %165 = arith.select %161, %163, %164 : vector<1x128xi1>, vector<1x128xf32>
    %166 = arith.addf %159, %165 : vector<1x128xf32>
    %c2_i32 = arith.constant 2 : i32
    %167 = vector.broadcast %c2_i32 : i32 to vector<1x128xi32>
    %168 = arith.cmpi eq, %153, %167 : vector<1x128xi32>
    %cst_52 = arith.constant 0.000000e+00 : f32
    %169 = vector.shape_cast %149 : vector<1x1xf32> to vector<1x1xf32>
    %170 = vector.broadcast %169 : vector<1x1xf32> to vector<1x128xf32>
    %171 = vector.broadcast %cst_52 : f32 to vector<1x128xf32>
    %172 = arith.select %168, %170, %171 : vector<1x128xi1>, vector<1x128xf32>
    %173 = arith.addf %166, %172 : vector<1x128xf32>
    %c3_i32 = arith.constant 3 : i32
    %174 = vector.broadcast %c3_i32 : i32 to vector<1x128xi32>
    %175 = arith.cmpi eq, %153, %174 : vector<1x128xi32>
    %cst_53 = arith.constant 0.000000e+00 : f32
    %176 = vector.shape_cast %152 : vector<1x1xf32> to vector<1x1xf32>
    %177 = vector.broadcast %176 : vector<1x1xf32> to vector<1x128xf32>
    %178 = vector.broadcast %cst_53 : f32 to vector<1x128xf32>
    %179 = arith.select %175, %177, %178 : vector<1x128xi1>, vector<1x128xf32>
    %180 = arith.addf %173, %179 : vector<1x128xf32>
    %c0_54 = arith.constant 0 : index
    %c0_55 = arith.constant 0 : index
    %181 = vector.load %arg5[%c0_54, %c0_55] : memref<1x128xf32, #tpu.memory_space<vmem>>, vector<1x128xf32>
    tpu.vector_store %arg5[%c0_54, %c0_55], %180 {strides = array<i32>} : memref<1x128xf32, #tpu.memory_space<vmem>>, vector<1x128xf32>,
    return
  }
}

</mosaic_0001>

<bundles_post_ra>
// kernel: tpu_custom_call.1
= control target key start
LH: loop header
LB: loop body
LE: loop exit
PB: predicated region body
PF: predicated region fallthrough
CT: control target
= control target key end

     0   :  { %11 = vsyncpa [#allocation4], 0  ;;  %s5336_s0 = inlined_call_operand.vmem [shape: f32[128,8], index: 0, kind: input, shape index: {}]   ;;  %s5337_s1 = inlined_call_operand.<no memory space> [shape: f32[1,1], index: 1, kind: input, shape index: {}]   ;;  %s5338_s2 = inlined_call_operand.vmem [shape: f32[128,128], index: 2, kind: input, shape index: {}]   ;;  %s5339_s3 = inlined_call_operand.hbm [shape: f32[128,128], index: 3, kind: input, shape index: {}]   ;;  %s5340_s4 = inlined_call_operand.hbm [shape: f32[128,128], index: 4, kind: input, shape index: {}]   ;;  %s5341_s5 = inlined_call_operand.hbm [shape: f32[1,128], index: 5, kind: output, shape index: {}]  }
   0x1   :  { %12 = vsyncpa [#allocation7], 0 }
   0x2   :  { %13 = vsyncpa [#allocation5], 0  ;;  %s3260_s18 = smov [#allocation3]   ;;  %s3188_s22 = scalar_lea.hbm %s5339_s3, 2048 }
   0x3   :  { %s25_s19 = sshll.u32 %s3260_s18, 4  ;;  %p3189_p0 = scmp.ne.s32.totalorder %s5339_s3, %s3188_s22  ;;  %s26_s19 = int_to_ptr.vmem [resolvable:$true] %s25_s19 }
   0x4   :  { %p3192_p1 = scmp.lt.u32.totalorder %s3188_s22, %s5339_s3 }
   0x6   :  { %p3194_p2 = pnand %p3192_p1, %p3189_p0 }
   0x8   :  { %3197 = shalt.err (!%p3194_p2)
}
   0x9   :  { %s3198_s27 = scalar_lea.vmem %s26_s19, 2048  ;;  %p3203_p4 = scmp.lt.s32.totalorder %s26_s19, %s26_s19 }
   0xa   :  { %p3199_p3 = scmp.ne.s32.totalorder %s26_s19, %s3198_s27  ;;  %p3204_p5 = scmp.lt.s32.totalorder %s3198_s27, %s3198_s27 }
   0xc   :  { %p3205_p6 = por %p3204_p5, %p3203_p4 }
   0xe   :  { %p3206_p7 = pnand %p3205_p6, %p3199_p3 }
  0x10   :  { %3209 = shalt.err (!%p3206_p7)
}
  0x11   :  { %s3261_s28 = smov 128   ;;  %s3262_s29 = smov 8  }
  0x12   :  { %31 = dma.hbm_to_vmem [thread:$0]  %s5339_s3, 2048, %s26_s19, [#allocation4], %s3261_s28, %s3261_s28, %s3262_s29  }
  0x13   :  { %s3263_s7 = smov [#allocation6]   ;;  %s3210_s11 = scalar_lea.hbm %s5340_s4, 2048 }
  0x14   :  { %s37_s8 = sshll.u32 %s3263_s7, 4  ;;  %p3211_p8 = scmp.ne.s32.totalorder %s5340_s4, %s3210_s11  ;;  %s38_s8 = int_to_ptr.vmem [resolvable:$true] %s37_s8 }
  0x15   :  { %p3214_p9 = scmp.lt.u32.totalorder %s3210_s11, %s5340_s4 }
  0x17   :  { %p3216_p10 = pnand %p3214_p9, %p3211_p8 }
  0x19   :  { %3219 = shalt.err (!%p3216_p10)
}
  0x1a   :  { %s3220_s16 = scalar_lea.vmem %s38_s8, 2048  ;;  %p3225_p12 = scmp.lt.s32.totalorder %s38_s8, %s38_s8 }
  0x1b   :  { %p3221_p11 = scmp.ne.s32.totalorder %s38_s8, %s3220_s16  ;;  %p3226_p13 = scmp.lt.s32.totalorder %s3220_s16, %s3220_s16 }
  0x1d   :  { %p3227_p0 = por %p3226_p13, %p3225_p12 }
  0x1f   :  { %p3228_p1 = pnand %p3227_p0, %p3221_p11 }
  0x21   :  { %3231 = shalt.err (!%p3228_p1)
}
  0x22   :  { %43 = dma.hbm_to_vmem [thread:$0]  %s5340_s4, 2048, %s38_s8, [#allocation7], %s3261_s28, %s3261_s28, %s3262_s29  }
  0x23   :  { %3254 = dma.done.wait [#allocation4], 2048  }
  0x24   :  { %3255 = vsyncadd [#allocation4], 4294965248 }
  0x25   :  { %3256 = dma.done.wait [#allocation7], 2048  }
  0x26   :  { %3257 = vsyncadd [#allocation7], 4294965248  ;;  %v3264_v0 = vmov 0.0|0.0   ;;  %vm5346_vm0 = vmmov 0   ;;  %v5342_v1 = vmov 0.0   ;;  %v67_v2 = vstv %s5337_s1  ;;  %v50_v4 = vld [vmem:[%s5336_s0] sm:$0xff] }
  0x27   :  { %3015 = vmatprep.subr.bf16.mxu1 %v3264_v0  ;;  %2824 = vmatprep.mubr.msk.f32.mxu1 %vm5346_vm0, %v5342_v1  ;;  %3154 = vrcp.f32 %v67_v2  ;;  %vm70_vm1 = vcmask 64512   ;;  %v3341_v5 = vld [vmem:[%s5336_s0 + $0x8] sm:$0xff]  ;;  %v3346_v6 = vld [vmem:[%s5336_s0 + $0x10] sm:$0xff]  ;;  %v264_v8 = vmul.f32 %v50_v4, %v50_v4  ;;  %v3354_v10 = vld [vmem:[%s5336_s0 + $0x18] sm:$0xff] }
  0x28   :  { %vm3331_vm2 = vmpackc.low %vm70_vm1, %vm70_vm1  ;;  %v2967_v7 = vpack.c.bf16 %v3341_v5, %v50_v4  ;;  %v265_v9 = vmul.f32 %v3341_v5, %v3341_v5  ;;  %2768 = vmatprep.mubr.msk.f32.mxu0 %vm70_vm1, %v50_v4  ;;  %v2973_v11 = vpack.c.bf16 %v3354_v10, %v3346_v6  ;;  %v266_v13 = vmul.f32 %v3346_v6, %v3346_v6  ;;  %v3376_v17 = vld [vmem:[%s5336_s0 + $0x20] sm:$0xff]  ;;  %v3381_v18 = vld [vmem:[%s5336_s0 + $0x28] sm:$0xff] }
  0x29   :  { %v267_v15 = vmul.f32 %v3354_v10, %v3354_v10  ;;  %v280_v19 = vsel %vm70_vm1, %v264_v8, 0.0  ;;  %v2979_v21 = vpack.c.bf16 %v3381_v18, %v3376_v17  ;;  %v269_v23 = vmul.f32 %v3381_v18, %v3381_v18  ;;  %v3392_v24 = vld [vmem:[%s5336_s0 + $0x38] sm:$0xff]  ;;  %v3408_v28 = vld [vmem:[%s5336_s0 + $0x30] sm:$0xff]  ;;  %v3415_v30 = vld [vmem:[%s5336_s0 + $0x48] sm:$0xff] }
  0x2a   :  { %2969 = vmatprep.subr.msk.bf16.mxu0 %vm3331_vm2, %v2967_v7  ;;  %v3016_v12 = vpack.c.bf16 %v265_v9, %v264_v8  ;;  %v286_v16 = vsel %vm70_vm1, %v266_v13, 0.0  ;;  %281 = vadd.xlane.f32.xlu0 %v280_v19  ;;  %v283_v25 = vsel %vm70_vm1, %v265_v9, 0.0  ;;  %v268_v27 = vmul.f32 %v3376_v17, %v3376_v17  ;;  %v3426_v36 = vld [vmem:[%s5336_s0 + $0x40] sm:$0xff]  ;;  %v3433_v38 = vld [vmem:[%s5336_s0 + $0x58] sm:$0xff]  ;;  %v3449_v42 = vld [vmem:[%s5336_s0 + $0x50] sm:$0xff] }
  0x2b   :  { %2972 = vmatpush3.bf16.xpose.msk.msra.mxu0 %vm3331_vm2, %v2967_v7  ;;  %287 = vadd.xlane.f32.xlu1 %v286_v16  ;;  %v3020_v20 = vpack.c.bf16 %v267_v15, %v266_v13  ;;  %v289_v22 = vsel %vm70_vm1, %v267_v15, 0.0  ;;  %v295_v26 = vsel %vm70_vm1, %v269_v23, 0.0  ;;  %v271_v29 = vmul.f32 %v3392_v24, %v3392_v24  ;;  %v3456_v44 = vld [vmem:[%s5336_s0 + $0x68] sm:$0xff]  ;;  %v62_v50 = vld [vmem:[%s5336_s0 + $0x60] sm:$0xff]  ;;  %v65_v52 = vld [vmem:[%s5336_s0 + $0x78] sm:$0xff] }
  0x2c   :  { %3018 = vmatpush3.bf16.xpose.msk.msra.mxu1 %vm3331_vm2, %v3016_v12  ;;  %2975 = vmatprep.subr.msk.bf16.mxu0 %vm3331_vm2, %v2973_v11  ;;  %v292_v31 = vsel %vm70_vm1, %v268_v27, 0.0  ;;  %v3024_v33 = vpack.c.bf16 %v269_v23, %v268_v27  ;;  %v2985_v34 = vpack.c.bf16 %v3392_v24, %v3408_v28  ;;  %v270_v35 = vmul.f32 %v3408_v28, %v3408_v28  ;;  %v64_v56 = vld [vmem:[%s5336_s0 + $0x70] sm:$0xff] }
  0x2d   :  { %3019 = vmatprep.subr.bf16.mxu1 %v3264_v0  ;;  %v301_v32 = vsel %vm70_vm1, %v271_v29, 0.0  ;;  %v273_v37 = vmul.f32 %v3415_v30, %v3415_v30  ;;  %v272_v41 = vmul.f32 %v3426_v36, %v3426_v36  ;;  %v275_v43 = vmul.f32 %v3433_v38, %v3433_v38 }
  0x2e   :  { %284 = vadd.xlane.f32.xlu0 %v283_v25  ;;  %v298_v39 = vsel %vm70_vm1, %v270_v35, 0.0  ;;  %v3028_v47 = vpack.c.bf16 %v271_v29, %v270_v35  ;;  %v2991_v48 = vpack.c.bf16 %v3415_v30, %v3426_v36  ;;  %v274_v49 = vmul.f32 %v3449_v42, %v3449_v42 }
  0x2f   :  { %290 = vadd.xlane.f32.xlu1 %v289_v22  ;;  %v307_v40 = vsel %vm70_vm1, %v273_v37, 0.0  ;;  %v304_v45 = vsel %vm70_vm1, %v272_v41, 0.0  ;;  %v313_v46 = vsel %vm70_vm1, %v275_v43, 0.0  ;;  %v277_v51 = vmul.f32 %v3456_v44, %v3456_v44 }
  0x30   :  { %v310_v53 = vsel %vm70_vm1, %v274_v49, 0.0  ;;  %v276_v55 = vmul.f32 %v62_v50, %v62_v50  ;;  %v279_v57 = vmul.f32 %v65_v52, %v65_v52  ;;  %v3032_v60 = vpack.c.bf16 %v273_v37, %v272_v41 }
  0x31   :  { %v3155_v14 = vpop.eup %3154  ;;  %v319_v54 = vsel %vm70_vm1, %v277_v51, 0.0  ;;  %v2997_v61 = vpack.c.bf16 %v3433_v38, %v3449_v42  ;;  %v278_v62 = vmul.f32 %v64_v56, %v64_v56  ;;  %v3036_v2 = vpack.c.bf16 %v275_v43, %v274_v49 }
  0x32   :  { %3143 = vpush %v3155_v14  ;;  %293 = vadd.xlane.f32.xlu0 %v292_v31  ;;  %v316_v58 = vsel %vm70_vm1, %v276_v55, 0.0  ;;  %v325_v59 = vsel %vm70_vm1, %v279_v57, 0.0  ;;  %v3003_v4 = vpack.c.bf16 %v3456_v44, %v62_v50  ;;  %v3040_v7 = vpack.c.bf16 %v277_v51, %v276_v55 }
  0x33   :  { %2978 = vmatpush3.bf16.xpose.msk.msra.mxu0 %vm3331_vm2, %v2973_v11  ;;  %296 = vadd.xlane.f32.xlu1 %v295_v26  ;;  %v322_v63 = vsel %vm70_vm1, %v278_v62, 0.0  ;;  %v3009_v8 = vpack.c.bf16 %v65_v52, %v64_v56  ;;  %v3044_v9 = vpack.c.bf16 %v279_v57, %v278_v62  ;;  %v5344_v11 = vmov 1.0  }
  0x34   :  { %3022 = vmatpush3.bf16.xpose.msk.msra.mxu1 %vm3331_vm2, %v3020_v20  ;;  %2981 = vmatprep.subr.msk.bf16.mxu0 %vm3331_vm2, %v2979_v21  ;;  %v449_v20 = vlaneseq }
  0x35   :  { %3023 = vmatprep.subr.bf16.mxu1 %v3264_v0 }
  0x36   :  { %299 = vadd.xlane.f32.xlu0 %v298_v39  ;;  %v3552_v22 = vshrl.u32 %v449_v20, 7  ;;  %v3557_v25 = vand.u32 127, %v449_v20 }
  0x37   :  { %302 = vadd.xlane.f32.xlu1 %v301_v32 }
  0x38   :  { %v3560_v26 = vadd.s32 8, %v3552_v22  ;;  %v3563_v29 = vadd.s32 24, %v3552_v22  ;;  %v3569_v31 = vadd.s32 40, %v3552_v22  ;;  %v3572_v32 = vadd.s32 32, %v3552_v22 }
  0x39   :  { %v3580_v37 = vadd.s32 48, %v3552_v22  ;;  %v3588_v43 = vadd.s32 64, %v3552_v22  ;;  %vm745_vm3 = vcmp.eq.s32.totalorder %v3552_v22, %v3557_v25 }
  0x3a   :  { %305 = vadd.xlane.f32.xlu0 %v304_v45  ;;  %v3594_v45 = vadd.s32 80, %v3552_v22  ;;  %vm748_vm4 = vcmp.eq.s32.totalorder %v3563_v29, %v3557_v25  ;;  %vm746_vm5 = vcmp.eq.s32.totalorder %v3560_v26, %v3557_v25  ;;  %vm749_vm7 = vcmp.eq.s32.totalorder %v3572_v32, %v3557_v25 }
  0x3b   :  { %2984 = vmatpush3.bf16.xpose.msk.msra.mxu0 %vm3331_vm2, %v2979_v21  ;;  %308 = vadd.xlane.f32.xlu1 %v307_v40  ;;  %vm750_vm8 = vcmp.eq.s32.totalorder %v3569_v31, %v3557_v25  ;;  %vm751_vm10 = vcmp.eq.s32.totalorder %v3580_v37, %v3557_v25  ;;  %vm753_vm11 = vcmp.eq.s32.totalorder %v3588_v43, %v3557_v25 }
  0x3c   :  { %3026 = vmatpush3.bf16.xpose.msk.msra.mxu1 %vm3331_vm2, %v3024_v33  ;;  %2987 = vmatprep.subr.msk.bf16.mxu0 %vm3331_vm2, %v2985_v34  ;;  %vm755_vm14 = vcmp.eq.s32.totalorder %v3594_v45, %v3557_v25  ;;  %v2028_v45 = vld [vmem:[%s5338_s2 + $0x18] sm:$0xff] }
  0x3d   :  { %3027 = vmatprep.subr.bf16.mxu1 %v3264_v0 }
  0x3e   :  { %311 = vadd.xlane.f32.xlu0 %v310_v53 }
  0x3f   :  { %314 = vadd.xlane.f32.xlu1 %v313_v46  ;;  %v3597_v46 = vadd.s32 104, %v3552_v22 }
  0x42   :  { %317 = vadd.xlane.f32.xlu0 %v316_v58 }
  0x43   :  { %2990 = vmatpush3.bf16.xpose.msk.msra.mxu0 %vm3331_vm2, %v2985_v34  ;;  %320 = vadd.xlane.f32.xlu1 %v319_v54 }
  0x44   :  { %3030 = vmatpush3.bf16.xpose.msk.msra.mxu1 %vm3331_vm2, %v3028_v47  ;;  %2993 = vmatprep.subr.msk.bf16.mxu0 %vm3331_vm2, %v2991_v48  ;;  %v3600_v47 = vadd.s32 96, %v3552_v22 }
  0x45   :  { %3031 = vmatprep.subr.bf16.mxu1 %v3264_v0 }
  0x46   :  { %323 = vadd.xlane.f32.xlu0 %v322_v63 }
  0x47   :  { %326 = vadd.xlane.f32.xlu1 %v325_v59 }
  0x4b   :  { %2996 = vmatpush3.bf16.xpose.msk.msra.mxu0 %vm3331_vm2, %v2991_v48  ;;  %v3603_v48 = vadd.s32 120, %v3552_v22 }
  0x4c   :  { %3034 = vmatpush3.bf16.xpose.msk.msra.mxu1 %vm3331_vm2, %v3032_v60  ;;  %2999 = vmatprep.subr.msk.bf16.mxu0 %vm3331_vm2, %v2997_v61 }
  0x4d   :  { %3035 = vmatprep.subr.bf16.mxu1 %v3264_v0 }
  0x53   :  { %3002 = vmatpush3.bf16.xpose.msk.msra.mxu0 %vm3331_vm2, %v2997_v61 }
  0x54   :  { %3038 = vmatpush3.bf16.xpose.msk.msra.mxu1 %vm3331_vm2, %v3036_v2  ;;  %3005 = vmatprep.subr.msk.bf16.mxu0 %vm3331_vm2, %v3003_v4 }
  0x55   :  { %3039 = vmatprep.subr.bf16.mxu1 %v3264_v0 }
  0x5b   :  { %3008 = vmatpush3.bf16.xpose.msk.msra.mxu0 %vm3331_vm2, %v3003_v4 }
  0x5c   :  { %3042 = vmatpush3.bf16.xpose.msk.msra.mxu1 %vm3331_vm2, %v3040_v7  ;;  %3011 = vmatprep.subr.msk.bf16.mxu0 %vm3331_vm2, %v3009_v8 }
  0x5d   :  { %3043 = vmatprep.subr.bf16.mxu1 %v3264_v0 }
  0x63   :  { %3014 = vmatpush3.bf16.xpose.msk.msra.mxu0 %vm3331_vm2, %v3009_v8  ;;  %s3144_s0 = spop %3143 }
  0x64   :  { %3046 = vmatpush3.bf16.xpose.msk.msra.mxu1 %vm3331_vm2, %v3044_v9  ;;  %3047 = vmatprep.subr.bf16.mxu0 %v3264_v0  ;;  %v3574_v35 = vstv %s3144_s0 }
  0x65   :  { %3071 = vmatprep.subr.bf16.mxu1 %v3264_v0 }
  0x6a   :  { %2769 = vmatmul.mubr.msk.f32.vlgmr.msra.gmra.mrb[0].mxu0 %vm70_vm1, %v3341_v5 }
  0x6b   :  { %2825 = vmatmul.mubr.msk.f32.vlgmr.msra.gmra.mrb[0].mxu1 %vm70_vm1, %v5344_v11  ;;  %2771 = vmatprep.mubr.msk.f32.mxu0 %vm70_vm1, %v3346_v6 }
  0x6c   :  { %2894 = vmatprep.mubr.msk.f32.mxu1 %vm5346_vm0, %v5342_v1 }
  0x6e   :  { %2772 = vmatmul.mubr.msk.f32.gmra.mrb[2].mxu0 %vm70_vm1, %v3354_v10 }
  0x6f   :  { %2774 = vmatprep.mubr.msk.f32.mxu0 %vm70_vm1, %v3376_v17 }
  0x72   :  { %2775 = vmatmul.mubr.msk.f32.gmra.mrb[4].mxu0 %vm70_vm1, %v3381_v18 }
  0x73   :  { %2777 = vmatprep.mubr.msk.f32.mxu0 %vm70_vm1, %v3408_v28 }
  0x76   :  { %2778 = vmatmul.mubr.msk.f32.gmra.mrb[6].mxu0 %vm70_vm1, %v3392_v24  ;;  %v451_v24 = vsub.s32 0, %v3552_v22 }
  0x77   :  { %2780 = vmatprep.mubr.msk.f32.mxu0 %vm70_vm1, %v3426_v36  ;;  %v3577_v36 = vadd.s32 56, %v3552_v22 }
  0x79   :  { %vm752_vm9 = vcmp.eq.s32.totalorder %v3577_v36, %v3557_v25 }
  0x7a   :  { %2781 = vmatmul.mubr.msk.f32.gmra.mrb[8].mxu0 %vm70_vm1, %v3415_v30  ;;  %v3566_v30 = vadd.s32 16, %v3552_v22 }
  0x7b   :  { %2783 = vmatprep.mubr.msk.f32.mxu0 %vm70_vm1, %v3449_v42 }
  0x7c   :  { %vm747_vm6 = vcmp.eq.s32.totalorder %v3566_v30, %v3557_v25 }
  0x7e   :  { %2784 = vmatmul.mubr.msk.f32.gmra.mrb[10].mxu0 %vm70_vm1, %v3433_v38  ;;  %v3583_v38 = vadd.s32 72, %v3552_v22 }
  0x7f   :  { %2786 = vmatprep.mubr.msk.f32.mxu0 %vm70_vm1, %v62_v50 }
  0x80   :  { %vm754_vm12 = vcmp.eq.s32.totalorder %v3583_v38, %v3557_v25 }
  0x82   :  { %2787 = vmatmul.mubr.msk.f32.gmra.mrb[12].mxu0 %vm70_vm1, %v3456_v44  ;;  %v3591_v44 = vadd.s32 88, %v3552_v22 }
  0x83   :  { %2789 = vmatprep.mubr.msk.f32.mxu0 %vm70_vm1, %v64_v56 }
  0x84   :  { %vm756_vm13 = vcmp.eq.s32.totalorder %v3591_v44, %v3557_v25 }
  0x86   :  { %2790 = vmatmul.mubr.msk.f32.gmra.mrb[14].mxu0 %vm70_vm1, %v65_v52 }
  0x87   :  { %2859 = vmatprep.mubr.msk.f32.mxu0 %vm5346_vm0, %v5342_v1 }
  0xb7   :  { %v282_v5 = vpop.xlane.xlu0 %281 }
  0xb8   :  { %v288_v3 = vpop.xlane.xlu1 %287 }
  0xbb   :  { %v285_v10 = vpop.xlane.xlu0 %284 }
  0xbc   :  { %v291_v6 = vpop.xlane.xlu1 %290 }
  0xbf   :  { %v294_v13 = vpop.xlane.xlu0 %293 }
  0xc0   :  { %v297_v12 = vpop.xlane.xlu1 %296 }
  0xc3   :  { %v300_v15 = vpop.xlane.xlu0 %299 }
  0xc4   :  { %v303_v14 = vpop.xlane.xlu1 %302 }
  0xc7   :  { %v306_v17 = vpop.xlane.xlu0 %305 }
  0xc8   :  { %v309_v16 = vpop.xlane.xlu1 %308 }
  0xcb   :  { %v312_v19 = vpop.xlane.xlu0 %311 }
  0xcc   :  { %v315_v18 = vpop.xlane.xlu1 %314 }
  0xcf   :  { %v3554_v23 = vpop.xlane.xlu0 %317 }
  0xd0   :  { %v3550_v21 = vpop.xlane.xlu1 %320 }
  0xd3   :  { %v324_v42 = vpop.xlane.xlu0 %323 }
  0xd4   :  { %v327_v28 = vpop.xlane.xlu1 %326 }
 0x13d   :  { %v2770_v27 = vpop.f32.mrb[0].mxu0 }
 0x13e   :  { %v445_v33 = vpop.f32.mrb[0].mxu1  ;;  %v185_v34 = vpop.f32.mrb[1].mxu0  ;;  %v470_v49 = vmul.f32 2.0, %v2770_v27 }
 0x13f   :  { %v3585_v39 = vrot.slane %v445_v33, %v451_v24  ;;  %v469_v40 = vmul.f32 2.0, %v185_v34  ;;  %v2826_v41 = vpop.f32.mrb[1].mxu1 }
 0x141   :  { %v453_v50 = vadd.f32 %v3585_v39, %v282_v5  ;;  %v3607_v51 = vadd.f32 %v3585_v39, %v327_v28  ;;  %v2773_v52 = vpop.f32.mrb[2].mxu0  ;;  %v456_v53 = vadd.f32 %v3585_v39, %v291_v6  ;;  %v3611_v54 = vadd.f32 %v3585_v39, %v324_v42 }
 0x142   :  { %v472_v55 = vmul.f32 2.0, %v2773_v52  ;;  %v195_v56 = vpop.f32.mrb[3].mxu0  ;;  %v455_v57 = vadd.f32 %v3585_v39, %v288_v3  ;;  %v458_v58 = vadd.f32 %v3585_v39, %v297_v12  ;;  %v457_v61 = vadd.f32 %v3585_v39, %v294_v13 }
 0x143   :  { %v485_v59 = vsub.f32 %v453_v50, %v469_v40  ;;  %v471_v60 = vmul.f32 2.0, %v195_v56  ;;  %v460_v62 = vadd.f32 %v3585_v39, %v303_v14  ;;  %v459_v2 = vadd.f32 %v3585_v39, %v300_v15 }
 0x144   :  { %v488_v63 = vsub.f32 %v456_v53, %v472_v55  ;;  %v3621_v4 = vadd.f32 %v3585_v39, %v309_v16  ;;  %v454_v7 = vadd.f32 %v3585_v39, %v285_v10  ;;  %v3631_v5 = vadd.f32 %v3585_v39, %v306_v17 }
 0x145   :  { %v3626_v8 = vmax.f32 %v485_v59, 0.0  ;;  %v487_v9 = vsub.f32 %v455_v57, %v471_v60  ;;  %v2776_v3 = vpop.f32.mrb[4].mxu0  ;;  %v3634_v6 = vadd.f32 %v3585_v39, %v315_v18  ;;  %v3641_v15 = vadd.f32 %v3585_v39, %v312_v19 }
 0x146   :  { %v3636_v12 = vmax.f32 %v488_v63, 0.0  ;;  %v474_v13 = vmul.f32 2.0, %v2776_v3  ;;  %v205_v10 = vpop.f32.mrb[5].mxu0  ;;  %v486_v14 = vsub.f32 %v454_v7, %v470_v49  ;;  %v3648_v18 = vadd.f32 %v3585_v39, %v3550_v21 }
 0x147   :  { %v3643_v16 = vmax.f32 %v487_v9, 0.0  ;;  %v473_v20 = vmul.f32 2.0, %v205_v10  ;;  %v665_v17 = vadd.f32 1e-20, %v3626_v8  ;;  %3156 = vrsqrt.f32 %v3626_v8 }
 0x148   :  { %v490_v24 = vsub.f32 %v458_v58, %v474_v13  ;;  %v3651_v27 = vmax.f32 %v486_v14, 0.0  ;;  %v668_v28 = vadd.f32 1e-20, %v3636_v12  ;;  %3158 = vrsqrt.f32 %v3636_v12 }
 0x149   :  { %v489_v19 = vsub.f32 %v457_v61, %v473_v20  ;;  %v2779_v33 = vpop.f32.mrb[6].mxu0  ;;  %v697_v34 = vand.u32 4294967168, %v665_v17  ;;  %v667_v40 = vadd.f32 1e-20, %v3643_v16  ;;  %3160 = vrsqrt.f32 %v3643_v16 }
 0x14a   :  { %v3656_v41 = vmax.f32 %v490_v24, 0.0  ;;  %v476_v42 = vmul.f32 2.0, %v2779_v33  ;;  %v215_v49 = vpop.f32.mrb[7].mxu0  ;;  %v666_v21 = vadd.f32 1e-20, %v3651_v27  ;;  %v700_v50 = vand.u32 4294967168, %v668_v28 }
 0x14b   :  { %v3659_v52 = vmax.f32 %v489_v19, 0.0  ;;  %v475_v53 = vmul.f32 2.0, %v215_v49  ;;  %v713_v55 = vor.u32 %v697_v34, %v3557_v25  ;;  %v699_v56 = vand.u32 4294967168, %v667_v40 }
 0x14c   :  { %v492_v57 = vsub.f32 %v460_v62, %v476_v42  ;;  %v698_v58 = vand.u32 4294967168, %v666_v21  ;;  %v716_v59 = vor.u32 %v700_v50, %v3557_v25  ;;  %3162 = vrsqrt.f32 %v3656_v41 }
 0x14d   :  { %v491_v60 = vsub.f32 %v459_v2, %v475_v53  ;;  %v2782_v61 = vpop.f32.mrb[8].mxu0  ;;  %v3670_v63 = vsel %vm745_vm3, inf, %v713_v55  ;;  %v715_v7 = vor.u32 %v699_v56, %v3557_v25  ;;  %3164 = vrsqrt.f32 %v3659_v52 }
 0x14e   :  { %v3676_v62 = vmax.f32 %v492_v57, 0.0  ;;  %v478_v9 = vmul.f32 2.0, %v2782_v61  ;;  %v714_v3 = vor.u32 %v698_v58, %v3557_v25  ;;  %777 = vmin.xlane.f32.xlu0 %v3670_v63  ;;  %v225_v2 = vpop.f32.mrb[9].mxu0  ;;  %v3689_v14 = vsel %vm748_vm4, inf, %v716_v59 }
 0x14f   :  { %v3684_v13 = vmax.f32 %v491_v60, 0.0  ;;  %v477_v10 = vmul.f32 2.0, %v225_v2  ;;  %v670_v20 = vadd.f32 1e-20, %v3656_v41  ;;  %v669_v28 = vadd.f32 1e-20, %v3659_v52 }
 0x150   :  { %3166 = vrsqrt.f32 %v3676_v62  ;;  %v494_v17 = vsub.f32 %v3621_v4, %v478_v9  ;;  %v3697_v24 = vsel %vm746_vm5, inf, %v714_v3  ;;  %v3706_v33 = vsel %vm747_vm6, inf, %v715_v7 }
 0x151   :  { %3168 = vrsqrt.f32 %v3684_v13  ;;  %779 = vmin.xlane.f32.xlu1 %v3697_v24  ;;  %v493_v29 = vsub.f32 %v3631_v5, %v477_v10  ;;  %v2785_v19 = vpop.f32.mrb[10].mxu0  ;;  %v702_v4 = vand.u32 4294967168, %v670_v20  ;;  %v3157_v34 = vpop.eup %3156  ;;  %v701_v49 = vand.u32 4294967168, %v669_v28 }
 0x152   :  { %v3708_v40 = vmax.f32 %v494_v17, 0.0  ;;  %v480_v26 = vmul.f32 2.0, %v2785_v19  ;;  %781 = vmin.xlane.f32.xlu0 %v3706_v33  ;;  %v235_v42 = vpop.f32.mrb[11].mxu0  ;;  %v672_v21 = vadd.f32 1e-20, %v3676_v62  ;;  %v3712_v50 = vpop.eup %3158  ;;  %v465_v61 = vadd.f32 %v3585_v39, %v3554_v23 }
 0x153   :  { %v3714_v5 = vmax.f32 %v493_v29, 0.0  ;;  %v479_v53 = vmul.f32 2.0, %v235_v42  ;;  %v718_v30 = vor.u32 %v702_v4, %v3557_v25  ;;  %v671_v55 = vadd.f32 1e-20, %v3684_v13  ;;  %v3730_v9 = vpop.eup %3160 }
 0x154   :  { %3170 = vrsqrt.f32 %v3708_v40  ;;  %v496_v56 = vsub.f32 %v3634_v6, %v480_v26  ;;  %v717_v57 = vor.u32 %v701_v49, %v3557_v25  ;;  %v704_v58 = vand.u32 4294967168, %v672_v21 }
 0x155   :  { %3172 = vrsqrt.f32 %v3714_v5  ;;  %783 = vmin.xlane.f32.xlu1 %v3689_v14  ;;  %v495_v59 = vsub.f32 %v3641_v15, %v479_v53  ;;  %v2788_v60 = vpop.f32.mrb[12].mxu0  ;;  %v703_v7 = vand.u32 4294967168, %v671_v55  ;;  %v674_v28 = vadd.f32 1e-20, %v3708_v40 }
 0x156   :  { %v3732_v6 = vmax.f32 %v496_v56, 0.0  ;;  %v482_v3 = vmul.f32 2.0, %v2788_v60  ;;  %v3737_v2 = vsel %vm749_vm7, inf, %v717_v57  ;;  %v245_v10 = vpop.f32.mrb[13].mxu0  ;;  %v720_v20 = vor.u32 %v704_v58, %v3557_v25  ;;  %v3740_v17 = vpop.eup %3162 }
 0x157   :  { %v3742_v15 = vmax.f32 %v495_v59, 0.0  ;;  %785 = vmin.xlane.f32.xlu0 %v3737_v2  ;;  %v481_v23 = vmul.f32 2.0, %v245_v10  ;;  %v719_v39 = vor.u32 %v703_v7, %v3557_v25  ;;  %v3747_v29 = vpop.eup %3164  ;;  %v3754_v19 = vsel %vm750_vm8, inf, %v718_v30 }
 0x158   :  { %3174 = vrsqrt.f32 %v3732_v6  ;;  %v498_v32 = vsub.f32 %v3648_v18, %v482_v3  ;;  %v673_v4 = vadd.f32 1e-20, %v3714_v5  ;;  %v3761_v49 = vsel %vm752_vm9, inf, %v720_v20 }
 0x159   :  { %787 = vmin.xlane.f32.xlu1 %v3754_v19  ;;  %v497_v26 = vsub.f32 %v465_v61, %v481_v23  ;;  %v2791_v42 = vpop.f32.mrb[14].mxu0  ;;  %v3766_v18 = vsel %vm751_vm10, inf, %v719_v39  ;;  %v706_v21 = vand.u32 4294967168, %v674_v28  ;;  %v518_v57 = vmul.f32 %v3157_v34, %v3626_v8 }
 0x15a   :  { %v3768_v31 = vpop.eup %3166  ;;  %v3770_v53 = vmax.f32 %v498_v32, 0.0  ;;  %v484_v30 = vmul.f32 2.0, %v2791_v42  ;;  %v255_v55 = vpop.f32.mrb[15].mxu0  ;;  %v705_v56 = vand.u32 4294967168, %v673_v4  ;;  %3176 = vrsqrt.f32 %v3742_v15  ;;  %v2025_v32 = vld [vmem:[%s5338_s2] sm:$0xff] }
 0x15b   :  { %v3773_v58 = vpop.eup %3168  ;;  %v3776_v36 = vmax.f32 %v497_v26, 0.0  ;;  %789 = vmin.xlane.f32.xlu0 %v3766_v18  ;;  %v483_v37 = vmul.f32 2.0, %v255_v55  ;;  %v722_v59 = vor.u32 %v706_v21, %v3557_v25  ;;  %vm519_vm15 = vcmp.eq.f32.partialorder %v3626_v8, inf  ;;  %v2009_v21 = vld [vmem:[#allocation3] sm:$0xff] }
 0x15c   :  { %3178 = vrsqrt.f32 %v3770_v53  ;;  %v500_v34 = vsub.f32 %v3607_v51, %v484_v30  ;;  %v721_v60 = vor.u32 %v705_v56, %v3557_v25  ;;  %v520_v7 = vsel %vm519_vm15, %v3626_v8, %v518_v57 }
 0x15d   :  { %3180 = vrsqrt.f32 %v3776_v36  ;;  %791 = vmin.xlane.f32.xlu1 %v3761_v49  ;;  %v499_v61 = vsub.f32 %v3611_v54, %v483_v37  ;;  %v3793_v3 = vadd.s32 112, %v3552_v22  ;;  %v522_v23 = vand.u32 2147483648, %v3626_v8 }
 0x15e   :  { %v3795_v10 = vpop.eup %3170  ;;  %v3797_v20 = vmax.f32 %v500_v34, 0.0  ;;  %v3802_v51 = vsel %vm753_vm11, inf, %v721_v60  ;;  %3182 = vrsqrt.f32 %v3651_v27  ;;  %v3813_v22 = vsel %vm754_vm12, inf, %v722_v59 }
 0x15f   :  { %v3806_v39 = vpop.eup %3172  ;;  %v3808_v54 = vmax.f32 %v499_v61, 0.0  ;;  %793 = vmin.xlane.f32.xlu0 %v3802_v51  ;;  %vm521_vm1 = vcmp.eq.f32.partialorder %v3626_v8, 0.0  ;;  %v529_v43 = vand.u32 2147483648, %v3651_v27  ;;  %v676_v4 = vadd.f32 1e-20, %v3732_v6  ;;  %v2027_v61 = vld [vmem:[%s5338_s2 + $0x10] sm:$0xff] }
 0x160   :  { %3184 = vrsqrt.f32 %v3797_v20  ;;  %v523_v28 = vsel %vm521_vm1, %v522_v23, %v520_v7  ;;  %v675_v26 = vadd.f32 1e-20, %v3742_v15  ;;  %v532_v8 = vmul.f32 %v3730_v9, %v3643_v16 }
 0x161   :  { %3186 = vrsqrt.f32 %v3808_v54  ;;  %795 = vmin.xlane.f32.xlu1 %v3813_v22  ;;  %v630_v38 = vmul.f32 %v3574_v35, %v523_v28  ;;  %vm533_vm2 = vcmp.eq.f32.partialorder %v3643_v16, inf  ;;  %vm758_vm3 = vcmp.eq.s32.totalorder %v3597_v46, %v3557_v25  ;;  %v2029_v46 = vld [vmem:[%s5338_s2 + $0x20] sm:$0xff] }
 0x162   :  { %vm757_vm4 = vcmp.eq.s32.totalorder %v3600_v47, %v3557_v25  ;;  %v3834_v42 = vpop.eup %3174  ;;  %vm526_vm5 = vcmp.eq.f32.partialorder %v3651_v27, inf  ;;  %v708_v30 = vand.u32 4294967168, %v676_v4  ;;  %v707_v55 = vand.u32 4294967168, %v675_v26 }
 0x163   :  { %vm535_vm6 = vcmp.eq.f32.partialorder %v3643_v16, 0.0  ;;  %v536_v56 = vand.u32 2147483648, %v3643_v16  ;;  %vm528_vm7 = vcmp.eq.f32.partialorder %v3651_v27, 0.0  ;;  %v3840_v9 = vsub.f32 %v2025_v32, %v630_v38  ;;  %v2011_v32 = vld [vmem:[#allocation3 + $0x10] sm:$0xff] }
 0x164   :  { %v534_v57 = vsel %vm533_vm2, %v3643_v16, %v532_v8  ;;  %v539_v37 = vmul.f32 %v3712_v50, %v3636_v12  ;;  %vm540_vm8 = vcmp.eq.f32.partialorder %v3636_v12, inf  ;;  %v724_v59 = vor.u32 %v708_v30, %v3557_v25  ;;  %v3852_v7 = vpop.eup %3176 }
 0x165   :  { %v723_v34 = vor.u32 %v707_v55, %v3557_v25  ;;  %v537_v60 = vsel %vm535_vm6, %v536_v56, %v534_v57  ;;  %vm542_vm9 = vcmp.eq.f32.partialorder %v3636_v12, 0.0  ;;  %v2057_v16 = vmul.f32 %v3840_v9, %v2009_v21 }
 0x166   :  { %v541_v23 = vsel %vm540_vm8, %v3636_v12, %v539_v37  ;;  %v543_v50 = vand.u32 2147483648, %v3636_v12  ;;  %v632_v28 = vmul.f32 %v3574_v35, %v537_v60  ;;  %v3858_v4 = vpop.eup %3178  ;;  %v3863_v26 = vsel %vm756_vm13, inf, %v724_v59  ;;  %v2012_v12 = vld [vmem:[#allocation3 + $0x18] sm:$0xff] }
 0x167   :  { %v3868_v38 = vsel %vm755_vm14, inf, %v723_v34  ;;  %v678_v8 = vadd.f32 1e-20, %v3770_v53  ;;  %v677_v21 = vadd.f32 1e-20, %v3776_v36  ;;  %v3872_v30 = vpop.eup %3180  ;;  %v3874_v55 = vmul.f32 %v2057_v16, %v2057_v16  ;;  %799 = vmin.xlane.f32.xlu1 %v3863_v26 }
 0x168   :  { %797 = vmin.xlane.f32.xlu0 %v3868_v38  ;;  %v544_v44 = vsel %vm542_vm9, %v543_v50, %v541_v23  ;;  %v3883_v56 = vsub.f32 %v2027_v61, %v632_v28  ;;  %vm547_vm10 = vcmp.eq.f32.partialorder %v3659_v52, inf  ;;  %v3183_v57 = vpop.eup %3182  ;;  %v546_v60 = vmul.f32 %v3747_v29, %v3659_v52 }
 0x169   :  { %v633_v37 = vmul.f32 %v3574_v35, %v544_v44  ;;  %v710_v59 = vand.u32 4294967168, %v678_v8  ;;  %v709_v34 = vand.u32 4294967168, %v677_v21  ;;  %v525_v16 = vmul.f32 %v3183_v57, %v3651_v27 }
 0x16a   :  { %v2059_v23 = vmul.f32 %v3883_v56, %v2011_v32  ;;  %vm549_vm11 = vcmp.eq.f32.partialorder %v3659_v52, 0.0  ;;  %v550_v61 = vand.u32 2147483648, %v3659_v52  ;;  %vm760_vm12 = vcmp.eq.s32.totalorder %v3603_v48, %v3557_v25  ;;  %v3895_v50 = vpop.eup %3184 }
 0x16b   :  { %v3897_v28 = vsub.f32 %v2028_v45, %v633_v37  ;;  %v726_v8 = vor.u32 %v710_v59, %v3557_v25  ;;  %v725_v29 = vor.u32 %v709_v34, %v3557_v25  ;;  %v548_v21 = vsel %vm547_vm10, %v3659_v52, %v546_v60  ;;  %v3906_v32 = vpop.eup %3186  ;;  %v2026_v59 = vld [vmem:[%s5338_s2 + $0x8] sm:$0xff] }
 0x16c   :  { %vm759_vm13 = vcmp.eq.s32.totalorder %v3793_v3, %v3557_v25  ;;  %v527_v44 = vsel %vm526_vm5, %v3651_v27, %v525_v16  ;;  %v3911_v57 = vmul.f32 %v2059_v23, %v2059_v23  ;;  %v551_v45 = vsel %vm549_vm11, %v550_v61, %v548_v21  ;;  %v2013_v21 = vld [vmem:[#allocation3 + $0x20] sm:$0xff] }
 0x16d   :  { %v553_v37 = vmul.f32 %v3740_v17, %v3656_v41  ;;  %v530_v52 = vsel %vm528_vm7, %v529_v43, %v527_v44  ;;  %v2060_v34 = vmul.f32 %v3897_v28, %v2012_v12  ;;  %v3926_v60 = vsel %vm758_vm3, inf, %v726_v8  ;;  %v2010_v43 = vld [vmem:[#allocation3 + $0x8] sm:$0xff] }
 0x16e   :  { %v3931_v17 = vsel %vm757_vm4, inf, %v725_v29  ;;  %v631_v16 = vmul.f32 %v3574_v35, %v530_v52  ;;  %803 = vmin.xlane.f32.xlu1 %v3926_v60  ;;  %vm554_vm14 = vcmp.eq.f32.partialorder %v3656_v41, inf  ;;  %vm556_vm15 = vcmp.eq.f32.partialorder %v3656_v41, 0.0  ;;  %v2030_v44 = vld [vmem:[%s5338_s2 + $0x28] sm:$0xff] }
 0x16f   :  { %801 = vmin.xlane.f32.xlu0 %v3931_v17  ;;  %v557_v27 = vand.u32 2147483648, %v3656_v41  ;;  %v3942_v47 = vmul.f32 %v2060_v34, %v2060_v34  ;;  %v555_v12 = vsel %vm554_vm14, %v3656_v41, %v553_v37  ;;  %v634_v23 = vmul.f32 %v3574_v35, %v551_v45 }
 0x170   :  { %v680_v61 = vadd.f32 1e-20, %v3797_v20  ;;  %v3947_v8 = vsub.f32 %v2026_v59, %v631_v16  ;;  %v679_v52 = vadd.f32 1e-20, %v3808_v54  ;;  %v560_v34 = vmul.f32 %v3773_v58, %v3684_v13 }
 0x171   :  { %v558_v29 = vsel %vm556_vm15, %v557_v27, %v555_v12  ;;  %v3051_v41 = vpack.c.bf16 %v3942_v47, %v3911_v57  ;;  %v3958_v37 = vsub.f32 %v2029_v46, %v634_v23  ;;  %v2014_v27 = vld [vmem:[#allocation3 + $0x28] sm:$0xff]  ;;  %vm561_vm1 = vcmp.eq.f32.partialorder %v3684_v13, inf }
 0x172   :  { %v635_v45 = vmul.f32 %v3574_v35, %v558_v29  ;;  %v712_v59 = vand.u32 4294967168, %v680_v61  ;;  %v2058_v16 = vmul.f32 %v3947_v8, %v2010_v43  ;;  %v711_v12 = vand.u32 4294967168, %v679_v52 }
 0x173   :  { %vm563_vm2 = vcmp.eq.f32.partialorder %v3684_v13, 0.0  ;;  %v2061_v58 = vmul.f32 %v3958_v37, %v2013_v21  ;;  %v562_v57 = vsel %vm561_vm1, %v3684_v13, %v560_v34  ;;  %v564_v23 = vand.u32 2147483648, %v3684_v13 }
 0x174   :  { %v3963_v1 = vsub.f32 %v2030_v44, %v635_v45  ;;  %v728_v11 = vor.u32 %v712_v59, %v3557_v25  ;;  %v2074_v47 = vmul.f32 %v2058_v16, %v2058_v16  ;;  %v727_v46 = vor.u32 %v711_v12, %v3557_v25  ;;  %v2015_v45 = vld [vmem:[#allocation3 + $0x30] sm:$0xff] }
 0x175   :  { %v567_v43 = vmul.f32 %v3768_v31, %v3676_v62  ;;  %v2077_v29 = vmul.f32 %v2061_v58, %v2061_v58  ;;  %vm568_vm3 = vcmp.eq.f32.partialorder %v3676_v62, inf  ;;  %v565_v31 = vsel %vm563_vm2, %v564_v23, %v562_v57 }
 0x176   :  { %v2062_v61 = vmul.f32 %v3963_v1, %v2014_v27  ;;  %v3976_v44 = vsel %vm760_vm12, inf, %v728_v11  ;;  %v3048_v21 = vpack.c.bf16 %v2074_v47, %v3874_v55  ;;  %v3984_v52 = vsel %vm759_vm13, inf, %v727_v46  ;;  %v2031_v11 = vld [vmem:[%s5338_s2 + $0x30] sm:$0xff]  ;;  %v2016_v47 = vld [vmem:[#allocation3 + $0x38] sm:$0xff] }
 0x177   :  { %807 = vmin.xlane.f32.xlu1 %v3976_v44  ;;  %v569_v34 = vsel %vm568_vm3, %v3676_v62, %v567_v43  ;;  %805 = vmin.xlane.f32.xlu0 %v3984_v52  ;;  %vm570_vm4 = vcmp.eq.f32.partialorder %v3676_v62, 0.0  ;;  %v571_v55 = vand.u32 2147483648, %v3676_v62  ;;  %v636_v3 = vmul.f32 %v3574_v35, %v565_v31  ;;  %v2032_v62 = vld [vmem:[%s5338_s2 + $0x38] sm:$0xff] }
 0x178   :  { %v2078_v48 = vmul.f32 %v2062_v61, %v2062_v61  ;;  %3049 = vmatpush3.bf16.msra.mxu0 %v3048_v21  ;;  %v574_v13 = vmul.f32 %v3806_v39, %v3714_v5  ;;  %vm575_vm5 = vcmp.eq.f32.partialorder %v3714_v5, inf  ;;  %vm577_vm6 = vcmp.eq.f32.partialorder %v3714_v5, 0.0 }
 0x179   :  { %v578_v59 = vand.u32 2147483648, %v3714_v5  ;;  %3050 = vmatprep.subr.bf16.mxu0 %v3264_v0  ;;  %v572_v27 = vsel %vm570_vm4, %v571_v55, %v569_v34  ;;  %v4005_v12 = vsub.f32 %v2031_v11, %v636_v3  ;;  %v581_v58 = vmul.f32 %v3795_v10, %v3708_v40  ;;  %v2033_v10 = vld [vmem:[%s5338_s2 + $0x40] sm:$0xff] }
 0x17a   :  { %v3054_v16 = vpack.c.bf16 %v2078_v48, %v2077_v29  ;;  %v637_v39 = vmul.f32 %v3574_v35, %v572_v27  ;;  %v576_v57 = vsel %vm575_vm5, %v3714_v5, %v574_v13  ;;  %vm582_vm7 = vcmp.eq.f32.partialorder %v3708_v40, inf  ;;  %v2017_v11 = vld [vmem:[#allocation3 + $0x40] sm:$0xff] }
 0x17b   :  { %vm584_vm8 = vcmp.eq.f32.partialorder %v3708_v40, 0.0  ;;  %v2063_v46 = vmul.f32 %v4005_v12, %v2015_v45  ;;  %v579_v23 = vsel %vm577_vm6, %v578_v59, %v576_v57  ;;  %v583_v43 = vsel %vm582_vm7, %v3708_v40, %v581_v58  ;;  %v2018_v45 = vld [vmem:[#allocation3 + $0x48] sm:$0xff] }
 0x17c   :  { %v585_v61 = vand.u32 2147483648, %v3708_v40  ;;  %3052 = vmatpush3.bf16.msra.mxu0 %v3051_v41  ;;  %v4019_v29 = vsub.f32 %v2032_v62, %v637_v39  ;;  %v638_v5 = vmul.f32 %v3574_v35, %v579_v23  ;;  %v588_v21 = vmul.f32 %v3852_v7, %v3742_v15  ;;  %v2034_v40 = vld [vmem:[%s5338_s2 + $0x48] sm:$0xff] }
 0x17d   :  { %vm589_vm9 = vcmp.eq.f32.partialorder %v3742_v15, inf  ;;  %3053 = vmatprep.subr.bf16.mxu0 %v3264_v0  ;;  %v2079_v31 = vmul.f32 %v2063_v46, %v2063_v46  ;;  %vm591_vm10 = vcmp.eq.f32.partialorder %v3742_v15, 0.0  ;;  %v592_v41 = vand.u32 2147483648, %v3742_v15 }
 0x17e   :  { %v586_v34 = vsel %vm584_vm8, %v585_v61, %v583_v43  ;;  %v2064_v48 = vmul.f32 %v4019_v29, %v2016_v47  ;;  %v4033_v7 = vsub.f32 %v2033_v10, %v638_v5  ;;  %v590_v3 = vsel %vm589_vm9, %v3742_v15, %v588_v21  ;;  %v2035_v15 = vld [vmem:[%s5338_s2 + $0x50] sm:$0xff]  ;;  %v2036_v10 = vld [vmem:[%s5338_s2 + $0x58] sm:$0xff] }
 0x17f   :  { %v639_v55 = vmul.f32 %v3574_v35, %v586_v34  ;;  %v593_v13 = vsel %vm591_vm10, %v592_v41, %v590_v3  ;;  %v595_v59 = vmul.f32 %v3834_v42, %v3732_v6  ;;  %vm596_vm11 = vcmp.eq.f32.partialorder %v3732_v6, inf  ;;  %v2019_v61 = vld [vmem:[#allocation3 + $0x50] sm:$0xff] }
 0x180   :  { %vm598_vm12 = vcmp.eq.f32.partialorder %v3732_v6, 0.0  ;;  %3055 = vmatpush3.bf16.msra.mxu0 %v3054_v16  ;;  %v2080_v27 = vmul.f32 %v2064_v48, %v2064_v48  ;;  %v2065_v58 = vmul.f32 %v4033_v7, %v2017_v11  ;;  %v599_v39 = vand.u32 2147483648, %v3732_v6 }
 0x181   :  { %v4040_v62 = vsub.f32 %v2034_v40, %v639_v55  ;;  %3056 = vmatprep.subr.bf16.mxu0 %v3264_v0  ;;  %v597_v42 = vsel %vm596_vm11, %v3732_v6, %v595_v59  ;;  %v640_v57 = vmul.f32 %v3574_v35, %v593_v13  ;;  %v602_v16 = vmul.f32 %v3872_v30, %v3776_v36 }
 0x182   :  { %vm603_vm13 = vcmp.eq.f32.partialorder %v3776_v36, inf  ;;  %v3057_v47 = vpack.c.bf16 %v2080_v27, %v2079_v31  ;;  %v2081_v23 = vmul.f32 %v2065_v58, %v2065_v58  ;;  %v600_v43 = vsel %vm598_vm12, %v599_v39, %v597_v42  ;;  %v2020_v31 = vld [vmem:[#allocation3 + $0x58] sm:$0xff]  ;;  %v2038_v39 = vld [vmem:[%s5338_s2 + $0x68] sm:$0xff] }
 0x183   :  { %v2066_v46 = vmul.f32 %v4040_v62, %v2018_v45  ;;  %v641_v5 = vmul.f32 %v3574_v35, %v600_v43  ;;  %v4058_v6 = vsub.f32 %v2035_v15, %v640_v57  ;;  %v604_v21 = vsel %vm603_vm13, %v3776_v36, %v602_v16  ;;  %v2021_v15 = vld [vmem:[#allocation3 + $0x60] sm:$0xff]  ;;  %v2022_v57 = vld [vmem:[#allocation3 + $0x68] sm:$0xff] }
 0x184   :  { %vm605_vm14 = vcmp.eq.f32.partialorder %v3776_v36, 0.0  ;;  %3058 = vmatpush3.bf16.msra.mxu0 %v3057_v47  ;;  %v606_v34 = vand.u32 2147483648, %v3776_v36  ;;  %v609_v11 = vmul.f32 %v3858_v4, %v3770_v53  ;;  %vm610_vm15 = vcmp.eq.f32.partialorder %v3770_v53, inf  ;;  %v2037_v36 = vld [vmem:[%s5338_s2 + $0x60] sm:$0xff] }
 0x185   :  { %v2082_v30 = vmul.f32 %v2066_v46, %v2066_v46  ;;  %3059 = vmatprep.subr.bf16.mxu0 %v3264_v0  ;;  %v4067_v40 = vsub.f32 %v2036_v10, %v641_v5  ;;  %v2067_v41 = vmul.f32 %v4058_v6, %v2019_v61  ;;  %vm612_vm1 = vcmp.eq.f32.partialorder %v3770_v53, 0.0 }
 0x186   :  { %v613_v48 = vand.u32 2147483648, %v3770_v53  ;;  %v607_v3 = vsel %vm605_vm14, %v606_v34, %v604_v21  ;;  %v611_v45 = vsel %vm610_vm15, %v3770_v53, %v609_v11  ;;  %v616_v4 = vmul.f32 %v3906_v32, %v3808_v54  ;;  %v2023_v11 = vld [vmem:[#allocation3 + $0x70] sm:$0xff] }
 0x187   :  { %v3060_v55 = vpack.c.bf16 %v2082_v30, %v2081_v23  ;;  %v2068_v13 = vmul.f32 %v4067_v40, %v2020_v31  ;;  %v2083_v59 = vmul.f32 %v2067_v41, %v2067_v41  ;;  %v642_v58 = vmul.f32 %v3574_v35, %v607_v3  ;;  %v2039_v30 = vld [vmem:[%s5338_s2 + $0x70] sm:$0xff]  ;;  %v2040_v41 = vld [vmem:[%s5338_s2 + $0x78] sm:$0xff]  ;;  %s3268_s2 = smov [#allocation8]  }
 0x188   :  { %v614_v27 = vsel %vm612_vm1, %v613_v48, %v611_v45  ;;  %vm617_vm2 = vcmp.eq.f32.partialorder %v3808_v54, inf  ;;  %vm619_vm3 = vcmp.eq.f32.partialorder %v3808_v54, 0.0  ;;  %v620_v32 = vand.u32 2147483648, %v3808_v54  ;;  %v2024_v45 = vld [vmem:[#allocation3 + $0x78] sm:$0xff]  ;;  %s2432_s25 = sshll.u32 %s3268_s2, 4  ;;  %s2433_s25 = int_to_ptr.vmem [resolvable:$true] %s2432_s25 }
 0x189   :  { %3061 = vmatpush3.bf16.msra.mxu0 %v3060_v55  ;;  %v643_v53 = vmul.f32 %v3574_v35, %v614_v27  ;;  %v2084_v42 = vmul.f32 %v2068_v13, %v2068_v13  ;;  %v4088_v16 = vsub.f32 %v2037_v36, %v642_v58  ;;  %v618_v47 = vsel %vm617_vm2, %v3808_v54, %v616_v4  ;;  %s3232_s26 = scalar_lea.vmem %s2433_s25, 16  ;;  %s3236_s27 = scalar_lea.vmem %s2433_s25, 32 }
 0x18a   :  { %3062 = vmatprep.subr.bf16.mxu0 %v3264_v0  ;;  %v623_v46 = vmul.f32 %v3895_v50, %v3797_v20  ;;  %v621_v43 = vsel %vm619_vm3, %v620_v32, %v618_v47  ;;  %vm624_vm4 = vcmp.eq.f32.partialorder %v3797_v20, inf  ;;  %v627_v21 = vand.u32 2147483648, %v3797_v20  ;;  %p3233_p2 = scmp.ne.s32.totalorder %s2433_s25, %s3232_s26  ;;  %p3237_p3 = scmp.lt.s32.totalorder %s2433_s25, %s2433_s25 }
 0x18b   :  { %v4093_v23 = vsub.f32 %v2038_v39, %v643_v53  ;;  %v3063_v61 = vpack.c.bf16 %v2084_v42, %v2083_v59  ;;  %v2069_v10 = vmul.f32 %v4088_v16, %v2021_v15  ;;  %vm626_vm5 = vcmp.eq.f32.partialorder %v3797_v20, 0.0  ;;  %p3238_p4 = scmp.lt.s32.totalorder %s3236_s27, %s3232_s26 }
 0x18c   :  { %v625_v5 = vsel %vm624_vm4, %v3797_v20, %v623_v46  ;;  %v644_v50 = vmul.f32 %v3574_v35, %v621_v43  ;;  %v5352_v39 = vmov 0.0  }
 0x18d   :  { %v2070_v54 = vmul.f32 %v4093_v23, %v2022_v57  ;;  %3064 = vmatpush3.bf16.msra.mxu0 %v3063_v61  ;;  %v2085_v31 = vmul.f32 %v2069_v10, %v2069_v10  ;;  %v628_v34 = vsel %vm626_vm5, %v627_v21, %v625_v5  ;;  %p3239_p5 = por %p3238_p4, %p3237_p3 }
 0x18e   :  { %3065 = vmatprep.subr.bf16.mxu0 %v3264_v0  ;;  %v645_v55 = vmul.f32 %v3574_v35, %v628_v34  ;;  %v4110_v3 = vsub.f32 %v2039_v30, %v644_v50  ;;  %v5351_v35 = vmov 1.0  }
 0x18f   :  { %v2086_v48 = vmul.f32 %v2070_v54, %v2070_v54  ;;  %p3240_p6 = pnand %p3239_p5, %p3233_p2 }
 0x190   :  { %v4112_v20 = vsub.f32 %v2040_v41, %v645_v55  ;;  %v2071_v4 = vmul.f32 %v4110_v3, %v2023_v11 }
 0x191   :  { %v3066_v36 = vpack.c.bf16 %v2086_v48, %v2085_v31 }
 0x192   :  { %v2072_v13 = vmul.f32 %v4112_v20, %v2024_v45  ;;  %v2087_v59 = vmul.f32 %v2071_v4, %v2071_v4 }
 0x193   :  { %3067 = vmatpush3.bf16.msra.mxu0 %v3066_v36 }
 0x194   :  { %3068 = vmatprep.subr.bf16.mxu0 %v3264_v0  ;;  %v2088_v27 = vmul.f32 %v2072_v13, %v2072_v13 }
 0x196   :  { %v3069_v58 = vpack.c.bf16 %v2088_v27, %v2087_v59 }
 0x198   :  { %3070 = vmatpush3.bf16.msra.mxu0 %v3069_v58 }
 0x199   :  { %3095 = vmatprep.subr.bf16.mxu0 %v3264_v0 }
 0x19b   :  { %2860 = vmatmul.mubr.f32.vlgmr.msra.gmra.mrb[16].mxu0 %v5351_v35 }
 0x19c   :  { %2929 = vmatprep.mubr.msk.f32.mxu0 %vm5346_vm0, %v5352_v39 }
 0x1db   :  { %v778_v53 = vpop.xlane.xlu0 %777 }
 0x1dc   :  { %v825_v15 = vand.u32 127, %v778_v53 }
 0x1de   :  { %v780_v32 = vpop.xlane.xlu1 %779  ;;  %vm4122_vm6 = vcmp.eq.s32.totalorder %v3557_v25, %v825_v15 }
 0x1df   :  { %v826_v57 = vand.u32 127, %v780_v32  ;;  %v782_v47 = vpop.xlane.xlu0 %781  ;;  %v4129_v46 = vsel %vm4122_vm6, inf, %v3670_v63 }
 0x1e0   :  { %v827_v43 = vand.u32 127, %v782_v47  ;;  %921 = vmin.xlane.f32.xlu0 %v4129_v46 }
 0x1e1   :  { %vm4133_vm7 = vcmp.eq.s32.totalorder %v3557_v25, %v826_v57 }
 0x1e2   :  { %v784_v10 = vpop.xlane.xlu1 %783  ;;  %v4140_v5 = vsel %vm4133_vm7, inf, %v3697_v24  ;;  %vm4143_vm8 = vcmp.eq.s32.totalorder %v3557_v25, %v827_v43 }
 0x1e3   :  { %v828_v63 = vand.u32 127, %v784_v10  ;;  %923 = vmin.xlane.f32.xlu1 %v4140_v5  ;;  %v4151_v30 = vsel %vm4143_vm8, inf, %v3706_v33  ;;  %v2493_v42 = vsel %vm4143_vm8, 1.0, %v5352_v39 }
 0x1e4   :  { %v786_v54 = vpop.xlane.xlu0 %785  ;;  %925 = vmin.xlane.f32.xlu0 %v4151_v30 }
 0x1e5   :  { %v829_v50 = vand.u32 127, %v786_v54  ;;  %vm4155_vm9 = vcmp.eq.s32.totalorder %v3557_v25, %v828_v63 }
 0x1e6   :  { %v788_v31 = vpop.xlane.xlu1 %787  ;;  %v4162_v34 = vsel %vm4155_vm9, inf, %v3689_v14 }
 0x1e7   :  { %v830_v11 = vand.u32 127, %v788_v31  ;;  %927 = vmin.xlane.f32.xlu1 %v4162_v34  ;;  %vm4166_vm10 = vcmp.eq.s32.totalorder %v3557_v25, %v829_v50 }
 0x1e8   :  { %v790_v41 = vpop.xlane.xlu0 %789  ;;  %v4173_v48 = vsel %vm4166_vm10, inf, %v3737_v2 }
 0x1e9   :  { %v831_v55 = vand.u32 127, %v790_v41  ;;  %vm4176_vm11 = vcmp.eq.s32.totalorder %v3557_v25, %v830_v11  ;;  %929 = vmin.xlane.f32.xlu0 %v4173_v48 }
 0x1ea   :  { %v792_v14 = vpop.xlane.xlu1 %791  ;;  %v4184_v36 = vsel %vm4176_vm11, inf, %v3754_v19 }
 0x1eb   :  { %v832_v4 = vand.u32 127, %v792_v14  ;;  %931 = vmin.xlane.f32.xlu1 %v4184_v36  ;;  %vm4188_vm12 = vcmp.eq.s32.totalorder %v3557_v25, %v831_v55 }
 0x1ec   :  { %v794_v13 = vpop.xlane.xlu0 %793  ;;  %v4195_v59 = vsel %vm4188_vm12, inf, %v3766_v18 }
 0x1ed   :  { %v833_v27 = vand.u32 127, %v794_v13  ;;  %vm4198_vm13 = vcmp.eq.s32.totalorder %v3557_v25, %v832_v4  ;;  %933 = vmin.xlane.f32.xlu0 %v4195_v59 }
 0x1ee   :  { %v796_v19 = vpop.xlane.xlu1 %795  ;;  %v4206_v53 = vsel %vm4198_vm13, inf, %v3761_v49 }
 0x1ef   :  { %v834_v15 = vand.u32 127, %v796_v19  ;;  %935 = vmin.xlane.f32.xlu1 %v4206_v53  ;;  %vm4210_vm14 = vcmp.eq.s32.totalorder %v3557_v25, %v833_v27 }
 0x1f0   :  { %v4217_v32 = vsel %vm4210_vm14, inf, %v3802_v51 }
 0x1f1   :  { %vm4220_vm15 = vcmp.eq.s32.totalorder %v3557_v25, %v834_v15  ;;  %937 = vmin.xlane.f32.xlu0 %v4217_v32 }
 0x1f2   :  { %v4228_v49 = vsel %vm4220_vm15, inf, %v3813_v22 }
 0x1f3   :  { %939 = vmin.xlane.f32.xlu1 %v4228_v49 }
 0x1f4   :  { %v800_v47 = vpop.xlane.xlu1 %799 }
 0x1f5   :  { %v798_v43 = vpop.xlane.xlu0 %797  ;;  %v836_v10 = vand.u32 127, %v800_v47  ;;  %v5381_v47 = vmov 0 }
 0x1f6   :  { %v835_v63 = vand.u32 127, %v798_v43 }
 0x1f7   :  { %vm4232_vm1 = vcmp.eq.s32.totalorder %v3557_v25, %v836_v10 }
 0x1f8   :  { %vm4237_vm2 = vcmp.eq.s32.totalorder %v3557_v25, %v835_v63  ;;  %v4244_v22 = vsel %vm4232_vm1, inf, %v3863_v26 }
 0x1f9   :  { %v4249_v50 = vsel %vm4237_vm2, inf, %v3868_v38  ;;  %943 = vmin.xlane.f32.xlu1 %v4244_v22  ;;  %v2501_v57 = vsel %vm4237_vm2, 1.0, %v5352_v39 }
 0x1fa   :  { %941 = vmin.xlane.f32.xlu0 %v4249_v50 }
 0x1fb   :  { %v804_v31 = vpop.xlane.xlu1 %803 }
 0x1fc   :  { %v802_v11 = vpop.xlane.xlu0 %801  ;;  %v838_v41 = vand.u32 127, %v804_v31 }
 0x1fd   :  { %v837_v55 = vand.u32 127, %v802_v11 }
 0x1fe   :  { %vm4254_vm3 = vcmp.eq.s32.totalorder %v3557_v25, %v838_v41 }
 0x1ff   :  { %vm4259_vm4 = vcmp.eq.s32.totalorder %v3557_v25, %v837_v55  ;;  %v4266_v38 = vsel %vm4254_vm3, inf, %v3926_v60 }
 0x200   :  { %v4271_v4 = vsel %vm4259_vm4, inf, %v3931_v17  ;;  %947 = vmin.xlane.f32.xlu1 %v4266_v38  ;;  %v5383_v17 = vmov 0 }
 0x201   :  { %945 = vmin.xlane.f32.xlu0 %v4271_v4 }
 0x204   :  { %v808_v13 = vpop.xlane.xlu1 %807  ;;  %v806_v19 = vpop.xlane.xlu0 %805 }
 0x205   :  { %v840_v27 = vand.u32 127, %v808_v13  ;;  %v839_v15 = vand.u32 127, %v806_v19  ;;  %v2492_v19 = vsel %vm4133_vm7, 1.0, %v5352_v39 }
 0x207   :  { %vm4276_vm5 = vcmp.eq.s32.totalorder %v3557_v25, %v840_v27  ;;  %vm4286_vm0 = vcmp.eq.s32.totalorder %v3557_v25, %v839_v15 }
 0x208   :  { %v5382_v47 = vsel %vm4276_vm5, 4294967295, %v5381_v47  ;;  %v4283_v60 = vsel %vm4276_vm5, inf, %v3976_v44  ;;  %v5384_v17 = vsel %vm4286_vm0, 4294967295, %v5383_v17  ;;  %v4294_v43 = vsel %vm4286_vm0, inf, %v3984_v52 }
 0x209   :  { %951 = vmin.xlane.f32.xlu1 %v4283_v60  ;;  %949 = vmin.xlane.f32.xlu0 %v4294_v43  ;;  %v2491_v44 = vsel %vm4122_vm6, 1.0, %v5352_v39 }
 0x26d   :  { %v922_v10 = vpop.xlane.xlu0 %921 }
 0x26e   :  { %v969_v63 = vand.u32 127, %v922_v10 }
 0x270   :  { %v924_v31 = vpop.xlane.xlu1 %923  ;;  %vm985_vm5 = vcmp.eq.s32.totalorder %v3557_v25, %v969_v63 }
 0x271   :  { %v970_v11 = vand.u32 127, %v924_v31  ;;  %v926_v41 = vpop.xlane.xlu0 %925  ;;  %v4302_v55 = vsel %vm985_vm5, inf, %v4129_v46  ;;  %v2507_v13 = vsel %vm985_vm5, 1.0, %v5352_v39  ;;  %vm5386_vm5 = vnez %v5384_v17 }
 0x272   :  { %v971_v52 = vand.u32 127, %v926_v41  ;;  %1065 = vmin.xlane.f32.xlu0 %v4302_v55  ;;  %v4306_v27 = vadd.f32 %v2507_v13, %v2491_v44  ;;  %v2494_v41 = vsel %vm4155_vm9, 1.0, %v5352_v39 }
 0x273   :  { %vm986_vm0 = vcmp.eq.s32.totalorder %v3557_v25, %v970_v11 }
 0x274   :  { %v928_v15 = vpop.xlane.xlu1 %927  ;;  %v4316_v46 = vsel %vm986_vm0, inf, %v4140_v5  ;;  %v2508_v10 = vsel %vm986_vm0, 1.0, %v5352_v39  ;;  %vm987_vm6 = vcmp.eq.s32.totalorder %v3557_v25, %v971_v52 }
 0x275   :  { %v972_v63 = vand.u32 127, %v928_v15  ;;  %1067 = vmin.xlane.f32.xlu1 %v4316_v46  ;;  %v4321_v31 = vadd.f32 %v2508_v10, %v2492_v19  ;;  %v4324_v61 = vsel %vm987_vm6, inf, %v4151_v30  ;;  %v2509_v44 = vsel %vm987_vm6, 1.0, %v5352_v39 }
 0x276   :  { %v930_v21 = vpop.xlane.xlu0 %929  ;;  %1069 = vmin.xlane.f32.xlu0 %v4324_v61  ;;  %v4328_v11 = vadd.f32 %v2509_v44, %v2493_v42  ;;  %v2495_v42 = vsel %vm4166_vm10, 1.0, %v5352_v39 }
 0x277   :  { %v973_v5 = vand.u32 127, %v930_v21  ;;  %vm988_vm0 = vcmp.eq.s32.totalorder %v3557_v25, %v972_v63  ;;  %v2496_v21 = vsel %vm4176_vm11, 1.0, %v5352_v39 }
 0x278   :  { %v932_v13 = vpop.xlane.xlu1 %931  ;;  %v4335_v52 = vsel %vm988_vm0, inf, %v4162_v34  ;;  %v2510_v30 = vsel %vm988_vm0, 1.0, %v5352_v39 }
 0x279   :  { %v974_v19 = vand.u32 127, %v932_v13  ;;  %1071 = vmin.xlane.f32.xlu1 %v4335_v52  ;;  %v4339_v15 = vadd.f32 %v2510_v30, %v2494_v41  ;;  %vm989_vm7 = vcmp.eq.s32.totalorder %v3557_v25, %v973_v5  ;;  %v2497_v30 = vsel %vm4188_vm12, 1.0, %v5352_v39 }
 0x27a   :  { %v934_v10 = vpop.xlane.xlu0 %933  ;;  %v4346_v24 = vsel %vm989_vm7, inf, %v4173_v48  ;;  %v2511_v34 = vsel %vm989_vm7, 1.0, %v5352_v39 }
 0x27b   :  { %v975_v63 = vand.u32 127, %v934_v10  ;;  %vm990_vm8 = vcmp.eq.s32.totalorder %v3557_v25, %v974_v19  ;;  %1073 = vmin.xlane.f32.xlu0 %v4346_v24  ;;  %v4351_v44 = vadd.f32 %v2511_v34, %v2495_v42  ;;  %v2498_v34 = vsel %vm4198_vm13, 1.0, %v5352_v39 }
 0x27c   :  { %v936_v5 = vpop.xlane.xlu1 %935  ;;  %v4357_v33 = vsel %vm990_vm8, inf, %v4184_v36  ;;  %v2512_v48 = vsel %vm990_vm8, 1.0, %v5352_v39 }
 0x27d   :  { %v976_v41 = vand.u32 127, %v936_v5  ;;  %1075 = vmin.xlane.f32.xlu1 %v4357_v33  ;;  %v4361_v13 = vadd.f32 %v2512_v48, %v2496_v21  ;;  %vm991_vm9 = vcmp.eq.s32.totalorder %v3557_v25, %v975_v63  ;;  %v2499_v48 = vsel %vm4210_vm14, 1.0, %v5352_v39 }
 0x27e   :  { %v938_v19 = vpop.xlane.xlu0 %937  ;;  %v4368_v45 = vsel %vm991_vm9, inf, %v4195_v59  ;;  %v2513_v36 = vsel %vm991_vm9, 1.0, %v5352_v39 }
 0x27f   :  { %v977_v42 = vand.u32 127, %v938_v19  ;;  %vm992_vm10 = vcmp.eq.s32.totalorder %v3557_v25, %v976_v41  ;;  %1077 = vmin.xlane.f32.xlu0 %v4368_v45  ;;  %v4373_v10 = vadd.f32 %v2513_v36, %v2497_v30  ;;  %v2500_v30 = vsel %vm4220_vm15, 1.0, %v5352_v39 }
 0x280   :  { %v940_v63 = vpop.xlane.xlu1 %939  ;;  %v4379_v2 = vsel %vm992_vm10, inf, %v4206_v53  ;;  %v2514_v59 = vsel %vm992_vm10, 1.0, %v5352_v39 }
 0x281   :  { %v978_v21 = vand.u32 127, %v940_v63  ;;  %1079 = vmin.xlane.f32.xlu1 %v4379_v2  ;;  %v4383_v5 = vadd.f32 %v2514_v59, %v2498_v34  ;;  %vm993_vm11 = vcmp.eq.s32.totalorder %v3557_v25, %v977_v42  ;;  %v2502_v59 = vsel %vm4232_vm1, 1.0, %v5352_v39 }
 0x282   :  { %v4390_v58 = vsel %vm993_vm11, inf, %v4217_v32  ;;  %v2515_v41 = vsel %vm993_vm11, 1.0, %v5352_v39 }
 0x283   :  { %vm994_vm12 = vcmp.eq.s32.totalorder %v3557_v25, %v978_v21  ;;  %1081 = vmin.xlane.f32.xlu0 %v4390_v58  ;;  %v4395_v53 = vadd.f32 %v2515_v41, %v2499_v48 }
 0x284   :  { %v4401_v19 = vsel %vm994_vm12, inf, %v4228_v49  ;;  %v2516_v18 = vsel %vm994_vm12, 1.0, %v5352_v39 }
 0x285   :  { %1083 = vmin.xlane.f32.xlu1 %v4401_v19  ;;  %v4405_v32 = vadd.f32 %v2516_v18, %v2500_v30 }
 0x286   :  { %v944_v36 = vpop.xlane.xlu1 %943 }
 0x287   :  { %v942_v42 = vpop.xlane.xlu0 %941  ;;  %v980_v34 = vand.u32 127, %v944_v36 }
 0x288   :  { %v979_v63 = vand.u32 127, %v942_v42  ;;  %v2504_v42 = vsel %vm4254_vm3, 1.0, %v5352_v39  ;;  %vm5385_vm3 = vnez %v5382_v47 }
 0x289   :  { %vm996_vm13 = vcmp.eq.s32.totalorder %v3557_v25, %v980_v34 }
 0x28a   :  { %vm995_vm14 = vcmp.eq.s32.totalorder %v3557_v25, %v979_v63  ;;  %v4416_v49 = vsel %vm996_vm13, inf, %v4244_v22  ;;  %v2518_v21 = vsel %vm996_vm13, 1.0, %v5352_v39 }
 0x28b   :  { %v4420_v48 = vsel %vm995_vm14, inf, %v4249_v50  ;;  %v2517_v41 = vsel %vm995_vm14, 1.0, %v5352_v39  ;;  %1087 = vmin.xlane.f32.xlu1 %v4416_v49  ;;  %v4424_v51 = vadd.f32 %v2518_v21, %v2502_v59  ;;  %v2503_v50 = vsel %vm4259_vm4, 1.0, %v5352_v39 }
 0x28c   :  { %1085 = vmin.xlane.f32.xlu0 %v4420_v48  ;;  %v4427_v54 = vadd.f32 %v2517_v41, %v2501_v57 }
 0x28d   :  { %v948_v30 = vpop.xlane.xlu1 %947 }
 0x28e   :  { %v946_v18 = vpop.xlane.xlu0 %945  ;;  %v982_v36 = vand.u32 127, %v948_v30 }
 0x28f   :  { %v981_v22 = vand.u32 127, %v946_v18 }
 0x290   :  { %vm998_vm15 = vcmp.eq.s32.totalorder %v3557_v25, %v982_v36 }
 0x291   :  { %vm997_vm1 = vcmp.eq.s32.totalorder %v3557_v25, %v981_v22  ;;  %v4438_v34 = vsel %vm998_vm15, inf, %v4266_v38  ;;  %v2520_v63 = vsel %vm998_vm15, 1.0, %v5352_v39  ;;  %v2505_v22 = vsel %vm5386_vm5, 1.0, %v5352_v39 }
 0x292   :  { %v4442_v59 = vsel %vm997_vm1, inf, %v4271_v4  ;;  %v2519_v57 = vsel %vm997_vm1, 1.0, %v5352_v39  ;;  %1091 = vmin.xlane.f32.xlu1 %v4438_v34  ;;  %v4446_v14 = vadd.f32 %v2520_v63, %v2504_v42  ;;  %v2506_v4 = vsel %vm5385_vm3, 1.0, %v5352_v39 }
 0x293   :  { %1089 = vmin.xlane.f32.xlu0 %v4442_v59  ;;  %v4449_v26 = vadd.f32 %v2519_v57, %v2503_v50 }
 0x296   :  { %v952_v21 = vpop.xlane.xlu1 %951  ;;  %v950_v30 = vpop.xlane.xlu0 %949 }
 0x297   :  { %v984_v41 = vand.u32 127, %v952_v21  ;;  %v983_v38 = vand.u32 127, %v950_v30 }
 0x299   :  { %vm1000_vm2 = vcmp.eq.s32.totalorder %v3557_v25, %v984_v41  ;;  %vm999_vm4 = vcmp.eq.s32.totalorder %v3557_v25, %v983_v38 }
 0x29a   :  { %v4456_v18 = vsel %vm1000_vm2, inf, %v4283_v60  ;;  %v2522_v36 = vsel %vm1000_vm2, 1.0, %v5352_v39  ;;  %v4467_v50 = vsel %vm999_vm4, inf, %v4294_v43  ;;  %v2521_v47 = vsel %vm999_vm4, 1.0, %v5352_v39 }
 0x29b   :  { %1095 = vmin.xlane.f32.xlu1 %v4456_v18  ;;  %v4464_v42 = vadd.f32 %v2522_v36, %v2506_v4  ;;  %1093 = vmin.xlane.f32.xlu0 %v4467_v50  ;;  %v4471_v60 = vadd.f32 %v2521_v47, %v2505_v22 }
 0x2ff   :  { %v1066_v63 = vpop.xlane.xlu0 %1065 }
 0x300   :  { %v1113_v57 = vand.u32 127, %v1066_v63 }
 0x302   :  { %v1068_v21 = vpop.xlane.xlu1 %1067  ;;  %vm1129_vm6 = vcmp.eq.s32.totalorder %v3557_v25, %v1113_v57 }
 0x303   :  { %v1114_v17 = vand.u32 127, %v1068_v21  ;;  %v1070_v41 = vpop.xlane.xlu0 %1069  ;;  %v4475_v30 = vsel %vm1129_vm6, inf, %v4302_v55  ;;  %v2523_v38 = vsel %vm1129_vm6, 1.0, %v5352_v39 }
 0x304   :  { %v1115_v43 = vand.u32 127, %v1070_v41  ;;  %1209 = vmin.xlane.f32.xlu0 %v4475_v30  ;;  %v4480_v4 = vadd.f32 %v2523_v38, %v4306_v27 }
 0x305   :  { %vm1130_vm0 = vcmp.eq.s32.totalorder %v3557_v25, %v1114_v17 }
 0x306   :  { %v1072_v36 = vpop.xlane.xlu1 %1071  ;;  %v4484_v22 = vsel %vm1130_vm0, inf, %v4316_v46  ;;  %v2524_v47 = vsel %vm1130_vm0, 1.0, %v5352_v39  ;;  %vm1131_vm7 = vcmp.eq.s32.totalorder %v3557_v25, %v1115_v43 }
 0x307   :  { %v1116_v55 = vand.u32 127, %v1072_v36  ;;  %1211 = vmin.xlane.f32.xlu1 %v4484_v22  ;;  %v4490_v63 = vadd.f32 %v2524_v47, %v4321_v31  ;;  %v4493_v57 = vsel %vm1131_vm7, inf, %v4324_v61  ;;  %v2525_v27 = vsel %vm1131_vm7, 1.0, %v5352_v39 }
 0x308   :  { %v1074_v21 = vpop.xlane.xlu0 %1073  ;;  %1213 = vmin.xlane.f32.xlu0 %v4493_v57  ;;  %v4498_v46 = vadd.f32 %v2525_v27, %v4328_v11 }
 0x309   :  { %v1117_v17 = vand.u32 127, %v1074_v21  ;;  %vm1132_vm8 = vcmp.eq.s32.totalorder %v3557_v25, %v1116_v55 }
 0x30a   :  { %v1076_v41 = vpop.xlane.xlu1 %1075  ;;  %v4502_v38 = vsel %vm1132_vm8, inf, %v4335_v52  ;;  %v2526_v31 = vsel %vm1132_vm8, 1.0, %v5352_v39 }
 0x30b   :  { %v1118_v43 = vand.u32 127, %v1076_v41  ;;  %1215 = vmin.xlane.f32.xlu1 %v4502_v38  ;;  %v4507_v61 = vadd.f32 %v2526_v31, %v4339_v15  ;;  %vm1133_vm9 = vcmp.eq.s32.totalorder %v3557_v25, %v1117_v17 }
 0x30c   :  { %v1078_v36 = vpop.xlane.xlu0 %1077  ;;  %v4511_v11 = vsel %vm1133_vm9, inf, %v4346_v24  ;;  %v2527_v47 = vsel %vm1133_vm9, 1.0, %v5352_v39 }
 0x30d   :  { %v1119_v55 = vand.u32 127, %v1078_v36  ;;  %vm1134_vm10 = vcmp.eq.s32.totalorder %v3557_v25, %v1118_v43  ;;  %1217 = vmin.xlane.f32.xlu0 %v4511_v11  ;;  %v4517_v52 = vadd.f32 %v2527_v47, %v4351_v44 }
 0x30e   :  { %v1080_v27 = vpop.xlane.xlu1 %1079  ;;  %v4520_v15 = vsel %vm1134_vm10, inf, %v4357_v33  ;;  %v2528_v21 = vsel %vm1134_vm10, 1.0, %v5352_v39 }
 0x30f   :  { %v1120_v17 = vand.u32 127, %v1080_v27  ;;  %1219 = vmin.xlane.f32.xlu1 %v4520_v15  ;;  %v4525_v24 = vadd.f32 %v2528_v21, %v4361_v13  ;;  %vm1135_vm11 = vcmp.eq.s32.totalorder %v3557_v25, %v1119_v55 }
 0x310   :  { %v1082_v41 = vpop.xlane.xlu0 %1081  ;;  %v4529_v31 = vsel %vm1135_vm11, inf, %v4368_v45  ;;  %v2529_v44 = vsel %vm1135_vm11, 1.0, %v5352_v39 }
 0x311   :  { %v1121_v43 = vand.u32 127, %v1082_v41  ;;  %vm1136_vm12 = vcmp.eq.s32.totalorder %v3557_v25, %v1120_v17  ;;  %1221 = vmin.xlane.f32.xlu0 %v4529_v31  ;;  %v4535_v33 = vadd.f32 %v2529_v44, %v4373_v10 }
 0x312   :  { %v1084_v36 = vpop.xlane.xlu1 %1083  ;;  %v4538_v13 = vsel %vm1136_vm12, inf, %v4379_v2  ;;  %v2530_v47 = vsel %vm1136_vm12, 1.0, %v5352_v39 }
 0x313   :  { %v1122_v55 = vand.u32 127, %v1084_v36  ;;  %1223 = vmin.xlane.f32.xlu1 %v4538_v13  ;;  %v4543_v45 = vadd.f32 %v2530_v47, %v4383_v5  ;;  %vm1137_vm13 = vcmp.eq.s32.totalorder %v3557_v25, %v1121_v43 }
 0x314   :  { %v4547_v27 = vsel %vm1137_vm13, inf, %v4390_v58  ;;  %v2531_v10 = vsel %vm1137_vm13, 1.0, %v5352_v39 }
 0x315   :  { %vm1138_vm14 = vcmp.eq.s32.totalorder %v3557_v25, %v1122_v55  ;;  %1225 = vmin.xlane.f32.xlu0 %v4547_v27  ;;  %v4553_v2 = vadd.f32 %v2531_v10, %v4395_v53 }
 0x316   :  { %v4556_v21 = vsel %vm1138_vm14, inf, %v4401_v19  ;;  %v2532_v5 = vsel %vm1138_vm14, 1.0, %v5352_v39 }
 0x317   :  { %1227 = vmin.xlane.f32.xlu1 %v4556_v21  ;;  %v4561_v17 = vadd.f32 %v2532_v5, %v4405_v32 }
 0x318   :  { %v1088_v58 = vpop.xlane.xlu1 %1087 }
 0x319   :  { %v1086_v41 = vpop.xlane.xlu0 %1085  ;;  %v1124_v44 = vand.u32 127, %v1088_v58 }
 0x31a   :  { %v1123_v43 = vand.u32 127, %v1086_v41 }
 0x31b   :  { %vm1140_vm15 = vcmp.eq.s32.totalorder %v3557_v25, %v1124_v44 }
 0x31c   :  { %vm1139_vm1 = vcmp.eq.s32.totalorder %v3557_v25, %v1123_v43  ;;  %v4566_v53 = vsel %vm1140_vm15, inf, %v4416_v49  ;;  %v2534_v19 = vsel %vm1140_vm15, 1.0, %v5352_v39 }
 0x31d   :  { %v4570_v36 = vsel %vm1139_vm1, inf, %v4420_v48  ;;  %v2533_v47 = vsel %vm1139_vm1, 1.0, %v5352_v39  ;;  %1231 = vmin.xlane.f32.xlu1 %v4566_v53  ;;  %v4575_v32 = vadd.f32 %v2534_v19, %v4424_v51 }
 0x31e   :  { %1229 = vmin.xlane.f32.xlu0 %v4570_v36  ;;  %v4579_v55 = vadd.f32 %v2533_v47, %v4427_v54 }
 0x31f   :  { %v1092_v10 = vpop.xlane.xlu1 %1091 }
 0x320   :  { %v1090_v49 = vpop.xlane.xlu0 %1089  ;;  %v1126_v5 = vand.u32 127, %v1092_v10 }
 0x321   :  { %v1125_v58 = vand.u32 127, %v1090_v49 }
 0x322   :  { %vm1142_vm2 = vcmp.eq.s32.totalorder %v3557_v25, %v1126_v5 }
 0x323   :  { %vm1141_vm3 = vcmp.eq.s32.totalorder %v3557_v25, %v1125_v58  ;;  %v4584_v48 = vsel %vm1142_vm2, inf, %v4438_v34  ;;  %v2536_v41 = vsel %vm1142_vm2, 1.0, %v5352_v39 }
 0x324   :  { %v4588_v51 = vsel %vm1141_vm3, inf, %v4442_v59  ;;  %v2535_v44 = vsel %vm1141_vm3, 1.0, %v5352_v39  ;;  %1235 = vmin.xlane.f32.xlu1 %v4584_v48  ;;  %v4593_v54 = vadd.f32 %v2536_v41, %v4446_v14 }
 0x325   :  { %1233 = vmin.xlane.f32.xlu0 %v4588_v51  ;;  %v4597_v43 = vadd.f32 %v2535_v44, %v4449_v26 }
 0x328   :  { %v1096_v19 = vpop.xlane.xlu1 %1095  ;;  %v1094_v47 = vpop.xlane.xlu0 %1093 }
 0x329   :  { %v1128_v34 = vand.u32 127, %v1096_v19  ;;  %v1127_v10 = vand.u32 127, %v1094_v47 }
 0x32b   :  { %vm1144_vm4 = vcmp.eq.s32.totalorder %v3557_v25, %v1128_v34  ;;  %vm1143_vm5 = vcmp.eq.s32.totalorder %v3557_v25, %v1127_v10 }
 0x32c   :  { %v4601_v59 = vsel %vm1144_vm4, inf, %v4456_v18  ;;  %v2538_v49 = vsel %vm1144_vm4, 1.0, %v5352_v39  ;;  %v4610_v26 = vsel %vm1143_vm5, inf, %v4467_v50  ;;  %v2537_v5 = vsel %vm1143_vm5, 1.0, %v5352_v39 }
 0x32d   :  { %1239 = vmin.xlane.f32.xlu1 %v4601_v59  ;;  %v4607_v14 = vadd.f32 %v2538_v49, %v4464_v42  ;;  %1237 = vmin.xlane.f32.xlu0 %v4610_v26  ;;  %v4615_v58 = vadd.f32 %v2537_v5, %v4471_v60 }
 0x391   :  { %v1210_v18 = vpop.xlane.xlu0 %1209 }
 0x392   :  { %v1257_v41 = vand.u32 127, %v1210_v18 }
 0x394   :  { %v1212_v44 = vpop.xlane.xlu1 %1211  ;;  %vm1273_vm6 = vcmp.eq.s32.totalorder %v3557_v25, %v1257_v41 }
 0x395   :  { %v1258_v19 = vand.u32 127, %v1212_v44  ;;  %v1214_v34 = vpop.xlane.xlu0 %1213  ;;  %v4619_v42 = vsel %vm1273_vm6, inf, %v4475_v30  ;;  %v2539_v50 = vsel %vm1273_vm6, 1.0, %v5352_v39 }
 0x396   :  { %v1259_v47 = vand.u32 127, %v1214_v34  ;;  %1353 = vmin.xlane.f32.xlu0 %v4619_v42  ;;  %v4624_v10 = vadd.f32 %v2539_v50, %v4480_v4 }
 0x397   :  { %vm1274_vm0 = vcmp.eq.s32.totalorder %v3557_v25, %v1258_v19 }
 0x398   :  { %v1216_v60 = vpop.xlane.xlu1 %1215  ;;  %v4628_v49 = vsel %vm1274_vm0, inf, %v4484_v22  ;;  %v2540_v5 = vsel %vm1274_vm0, 1.0, %v5352_v39  ;;  %vm1275_vm7 = vcmp.eq.s32.totalorder %v3557_v25, %v1259_v47 }
 0x399   :  { %v1260_v30 = vand.u32 127, %v1216_v60  ;;  %1355 = vmin.xlane.f32.xlu1 %v4628_v49  ;;  %v4634_v18 = vadd.f32 %v2540_v5, %v4490_v63  ;;  %v4637_v41 = vsel %vm1275_vm7, inf, %v4493_v57  ;;  %v2541_v4 = vsel %vm1275_vm7, 1.0, %v5352_v39 }
 0x39a   :  { %v1218_v44 = vpop.xlane.xlu0 %1217  ;;  %1357 = vmin.xlane.f32.xlu0 %v4637_v41  ;;  %v4642_v22 = vadd.f32 %v2541_v4, %v4498_v46 }
 0x39b   :  { %v1261_v19 = vand.u32 127, %v1218_v44  ;;  %vm1276_vm8 = vcmp.eq.s32.totalorder %v3557_v25, %v1260_v30 }
 0x39c   :  { %v1220_v34 = vpop.xlane.xlu1 %1219  ;;  %v4646_v50 = vsel %vm1276_vm8, inf, %v4502_v38  ;;  %v2542_v63 = vsel %vm1276_vm8, 1.0, %v5352_v39 }
 0x39d   :  { %v1262_v47 = vand.u32 127, %v1220_v34  ;;  %1359 = vmin.xlane.f32.xlu1 %v4646_v50  ;;  %v4651_v57 = vadd.f32 %v2542_v63, %v4507_v61  ;;  %vm1277_vm9 = vcmp.eq.s32.totalorder %v3557_v25, %v1261_v19 }
 0x39e   :  { %v1222_v60 = vpop.xlane.xlu0 %1221  ;;  %v4655_v46 = vsel %vm1277_vm9, inf, %v4511_v11  ;;  %v2543_v5 = vsel %vm1277_vm9, 1.0, %v5352_v39 }
 0x39f   :  { %v1263_v30 = vand.u32 127, %v1222_v60  ;;  %vm1278_vm10 = vcmp.eq.s32.totalorder %v3557_v25, %v1262_v47  ;;  %1361 = vmin.xlane.f32.xlu0 %v4655_v46  ;;  %v4661_v38 = vadd.f32 %v2543_v5, %v4517_v52 }
 0x3a0   :  { %v1224_v4 = vpop.xlane.xlu1 %1223  ;;  %v4664_v61 = vsel %vm1278_vm10, inf, %v4520_v15  ;;  %v2544_v44 = vsel %vm1278_vm10, 1.0, %v5352_v39 }
 0x3a1   :  { %v1264_v19 = vand.u32 127, %v1224_v4  ;;  %1363 = vmin.xlane.f32.xlu1 %v4664_v61  ;;  %v4669_v11 = vadd.f32 %v2544_v44, %v4525_v24  ;;  %vm1279_vm11 = vcmp.eq.s32.totalorder %v3557_v25, %v1263_v30 }
 0x3a2   :  { %v1226_v34 = vpop.xlane.xlu0 %1225  ;;  %v4673_v63 = vsel %vm1279_vm11, inf, %v4529_v31  ;;  %v2545_v52 = vsel %vm1279_vm11, 1.0, %v5352_v39 }
 0x3a3   :  { %v1265_v47 = vand.u32 127, %v1226_v34  ;;  %vm1280_vm12 = vcmp.eq.s32.totalorder %v3557_v25, %v1264_v19  ;;  %1365 = vmin.xlane.f32.xlu0 %v4673_v63  ;;  %v4679_v15 = vadd.f32 %v2545_v52, %v4535_v33 }
 0x3a4   :  { %v1228_v60 = vpop.xlane.xlu1 %1227  ;;  %v4682_v24 = vsel %vm1280_vm12, inf, %v4538_v13  ;;  %v2546_v5 = vsel %vm1280_vm12, 1.0, %v5352_v39 }
 0x3a5   :  { %v1266_v30 = vand.u32 127, %v1228_v60  ;;  %1367 = vmin.xlane.f32.xlu1 %v4682_v24  ;;  %v4687_v31 = vadd.f32 %v2546_v5, %v4543_v45  ;;  %vm1281_vm13 = vcmp.eq.s32.totalorder %v3557_v25, %v1265_v47 }
 0x3a6   :  { %v4691_v4 = vsel %vm1281_vm13, inf, %v4547_v27  ;;  %v2547_v33 = vsel %vm1281_vm13, 1.0, %v5352_v39 }
 0x3a7   :  { %vm1282_vm14 = vcmp.eq.s32.totalorder %v3557_v25, %v1266_v30  ;;  %1369 = vmin.xlane.f32.xlu0 %v4691_v4  ;;  %v4697_v13 = vadd.f32 %v2547_v33, %v4553_v2 }
 0x3a8   :  { %v4700_v44 = vsel %vm1282_vm14, inf, %v4556_v21  ;;  %v2548_v45 = vsel %vm1282_vm14, 1.0, %v5352_v39 }
 0x3a9   :  { %1371 = vmin.xlane.f32.xlu1 %v4700_v44  ;;  %v4705_v19 = vadd.f32 %v2548_v45, %v4561_v17 }
 0x3aa   :  { %v1232_v27 = vpop.xlane.xlu1 %1231 }
 0x3ab   :  { %v1230_v34 = vpop.xlane.xlu0 %1229  ;;  %v1268_v52 = vand.u32 127, %v1232_v27 }
 0x3ac   :  { %v1267_v47 = vand.u32 127, %v1230_v34 }
 0x3ad   :  { %vm1284_vm15 = vcmp.eq.s32.totalorder %v3557_v25, %v1268_v52 }
 0x3ae   :  { %vm1283_vm1 = vcmp.eq.s32.totalorder %v3557_v25, %v1267_v47  ;;  %v4710_v2 = vsel %vm1284_vm15, inf, %v4566_v53  ;;  %v2550_v21 = vsel %vm1284_vm15, 1.0, %v5352_v39 }
 0x3af   :  { %v4714_v60 = vsel %vm1283_vm1, inf, %v4570_v36  ;;  %v2549_v5 = vsel %vm1283_vm1, 1.0, %v5352_v39  ;;  %1375 = vmin.xlane.f32.xlu1 %v4710_v2  ;;  %v4719_v17 = vadd.f32 %v2550_v21, %v4575_v32 }
 0x3b0   :  { %1373 = vmin.xlane.f32.xlu0 %v4714_v60  ;;  %v4723_v30 = vadd.f32 %v2549_v5, %v4579_v55 }
 0x3b1   :  { %v1236_v33 = vpop.xlane.xlu1 %1235 }
 0x3b2   :  { %v1234_v53 = vpop.xlane.xlu0 %1233  ;;  %v1270_v45 = vand.u32 127, %v1236_v33 }
 0x3b3   :  { %v1269_v27 = vand.u32 127, %v1234_v53 }
 0x3b4   :  { %vm1286_vm2 = vcmp.eq.s32.totalorder %v3557_v25, %v1270_v45 }
 0x3b5   :  { %vm1285_vm3 = vcmp.eq.s32.totalorder %v3557_v25, %v1269_v27  ;;  %v4728_v36 = vsel %vm1286_vm2, inf, %v4584_v48  ;;  %v2552_v34 = vsel %vm1286_vm2, 1.0, %v5352_v39 }
 0x3b6   :  { %v4732_v32 = vsel %vm1285_vm3, inf, %v4588_v51  ;;  %v2551_v52 = vsel %vm1285_vm3, 1.0, %v5352_v39  ;;  %1379 = vmin.xlane.f32.xlu1 %v4728_v36  ;;  %v4737_v55 = vadd.f32 %v2552_v34, %v4593_v54 }
 0x3b7   :  { %1377 = vmin.xlane.f32.xlu0 %v4732_v32  ;;  %v4741_v47 = vadd.f32 %v2551_v52, %v4597_v43 }
 0x3ba   :  { %v1240_v21 = vpop.xlane.xlu1 %1239  ;;  %v1238_v5 = vpop.xlane.xlu0 %1237 }
 0x3bb   :  { %v1272_v48 = vand.u32 127, %v1240_v21  ;;  %v1271_v33 = vand.u32 127, %v1238_v5 }
 0x3bd   :  { %vm1288_vm4 = vcmp.eq.s32.totalorder %v3557_v25, %v1272_v48  ;;  %vm1287_vm5 = vcmp.eq.s32.totalorder %v3557_v25, %v1271_v33 }
 0x3be   :  { %v4745_v51 = vsel %vm1288_vm4, inf, %v4601_v59  ;;  %v2554_v53 = vsel %vm1288_vm4, 1.0, %v5352_v39  ;;  %v4754_v43 = vsel %vm1287_vm5, inf, %v4610_v26  ;;  %v2553_v45 = vsel %vm1287_vm5, 1.0, %v5352_v39 }
 0x3bf   :  { %1383 = vmin.xlane.f32.xlu1 %v4745_v51  ;;  %v4751_v54 = vadd.f32 %v2554_v53, %v4607_v14  ;;  %1381 = vmin.xlane.f32.xlu0 %v4754_v43  ;;  %v4759_v27 = vadd.f32 %v2553_v45, %v4615_v58 }
 0x423   :  { %v1354_v59 = vpop.xlane.xlu0 %1353 }
 0x424   :  { %v1401_v34 = vand.u32 127, %v1354_v59 }
 0x426   :  { %v1356_v52 = vpop.xlane.xlu1 %1355  ;;  %vm1417_vm6 = vcmp.eq.s32.totalorder %v3557_v25, %v1401_v34 }
 0x427   :  { %v1402_v21 = vand.u32 127, %v1356_v52  ;;  %v1358_v48 = vpop.xlane.xlu0 %1357  ;;  %v4763_v14 = vsel %vm1417_vm6, inf, %v4619_v42  ;;  %v2555_v26 = vsel %vm1417_vm6, 1.0, %v5352_v39 }
 0x428   :  { %v1403_v5 = vand.u32 127, %v1358_v48  ;;  %1497 = vmin.xlane.f32.xlu0 %v4763_v14  ;;  %v4768_v33 = vadd.f32 %v2555_v26, %v4624_v10 }
 0x429   :  { %vm1418_vm0 = vcmp.eq.s32.totalorder %v3557_v25, %v1402_v21 }
 0x42a   :  { %v1360_v58 = vpop.xlane.xlu1 %1359  ;;  %vm1419_vm7 = vcmp.eq.s32.totalorder %v3557_v25, %v1403_v5  ;;  %v4773_v53 = vsel %vm1418_vm0, inf, %v4628_v49  ;;  %v2556_v45 = vsel %vm1418_vm0, 1.0, %v5352_v39 }
 0x42b   :  { %v1404_v42 = vand.u32 127, %v1360_v58  ;;  %v2557_v59 = vsel %vm1419_vm7, 1.0, %v5352_v39  ;;  %1499 = vmin.xlane.f32.xlu1 %v4773_v53  ;;  %v4779_v34 = vadd.f32 %v2556_v45, %v4634_v18  ;;  %v4782_v10 = vsel %vm1419_vm7, inf, %v4637_v41 }
 0x42c   :  { %v4785_v52 = vadd.f32 %v2557_v59, %v4642_v22  ;;  %v1362_v21 = vpop.xlane.xlu0 %1361  ;;  %1501 = vmin.xlane.f32.xlu0 %v4782_v10 }
 0x42d   :  { %vm1420_vm8 = vcmp.eq.s32.totalorder %v3557_v25, %v1404_v42  ;;  %v1405_v49 = vand.u32 127, %v1362_v21 }
 0x42e   :  { %v2558_v48 = vsel %vm1420_vm8, 1.0, %v5352_v39  ;;  %v1364_v26 = vpop.xlane.xlu1 %1363  ;;  %v4791_v5 = vsel %vm1420_vm8, inf, %v4646_v50 }
 0x42f   :  { %v4794_v18 = vadd.f32 %v2558_v48, %v4651_v57  ;;  %v1406_v41 = vand.u32 127, %v1364_v26  ;;  %vm1421_vm9 = vcmp.eq.s32.totalorder %v3557_v25, %v1405_v49  ;;  %1503 = vmin.xlane.f32.xlu1 %v4791_v5 }
 0x430   :  { %v2559_v22 = vsel %vm1421_vm9, 1.0, %v5352_v39  ;;  %v1366_v58 = vpop.xlane.xlu0 %1365  ;;  %v4800_v45 = vsel %vm1421_vm9, inf, %v4655_v46 }
 0x431   :  { %vm1422_vm10 = vcmp.eq.s32.totalorder %v3557_v25, %v1406_v41  ;;  %v4804_v42 = vadd.f32 %v2559_v22, %v4661_v38  ;;  %v1407_v50 = vand.u32 127, %v1366_v58  ;;  %1505 = vmin.xlane.f32.xlu0 %v4800_v45 }
 0x432   :  { %v2560_v57 = vsel %vm1422_vm10, 1.0, %v5352_v39  ;;  %v1368_v59 = vpop.xlane.xlu1 %1367  ;;  %v4809_v21 = vsel %vm1422_vm10, inf, %v4664_v61 }
 0x433   :  { %v4812_v49 = vadd.f32 %v2560_v57, %v4669_v11  ;;  %v1408_v48 = vand.u32 127, %v1368_v59  ;;  %vm1423_vm11 = vcmp.eq.s32.totalorder %v3557_v25, %v1407_v50  ;;  %1507 = vmin.xlane.f32.xlu1 %v4809_v21 }
 0x434   :  { %v2561_v46 = vsel %vm1423_vm11, 1.0, %v5352_v39  ;;  %v1370_v38 = vpop.xlane.xlu0 %1369  ;;  %v4818_v26 = vsel %vm1423_vm11, inf, %v4673_v63 }
 0x435   :  { %vm1424_vm12 = vcmp.eq.s32.totalorder %v3557_v25, %v1408_v48  ;;  %v4822_v41 = vadd.f32 %v2561_v46, %v4679_v15  ;;  %v1409_v61 = vand.u32 127, %v1370_v38  ;;  %1509 = vmin.xlane.f32.xlu0 %v4818_v26 }
 0x436   :  { %v2562_v11 = vsel %vm1424_vm12, 1.0, %v5352_v39  ;;  %v1372_v22 = vpop.xlane.xlu1 %1371  ;;  %v4827_v58 = vsel %vm1424_vm12, inf, %v4682_v24 }
 0x437   :  { %v4830_v50 = vadd.f32 %v2562_v11, %v4687_v31  ;;  %v1410_v57 = vand.u32 127, %v1372_v22  ;;  %vm1425_vm13 = vcmp.eq.s32.totalorder %v3557_v25, %v1409_v61  ;;  %1511 = vmin.xlane.f32.xlu1 %v4827_v58 }
 0x438   :  { %v2563_v63 = vsel %vm1425_vm13, 1.0, %v5352_v39  ;;  %v4836_v15 = vsel %vm1425_vm13, inf, %v4691_v4 }
 0x439   :  { %vm1426_vm14 = vcmp.eq.s32.totalorder %v3557_v25, %v1410_v57  ;;  %v4840_v59 = vadd.f32 %v2563_v63, %v4697_v13  ;;  %1513 = vmin.xlane.f32.xlu0 %v4836_v15 }
 0x43a   :  { %v2564_v24 = vsel %vm1426_vm14, 1.0, %v5352_v39  ;;  %v4845_v31 = vsel %vm1426_vm14, inf, %v4700_v44 }
 0x43b   :  { %v4848_v48 = vadd.f32 %v2564_v24, %v4705_v19  ;;  %1515 = vmin.xlane.f32.xlu1 %v4845_v31 }
 0x43c   :  { %v1376_v46 = vpop.xlane.xlu1 %1375 }
 0x43d   :  { %v1374_v4 = vpop.xlane.xlu0 %1373  ;;  %v1412_v38 = vand.u32 127, %v1376_v46 }
 0x43e   :  { %v1411_v61 = vand.u32 127, %v1374_v4 }
 0x43f   :  { %vm1428_vm15 = vcmp.eq.s32.totalorder %v3557_v25, %v1412_v38 }
 0x440   :  { %vm1427_vm1 = vcmp.eq.s32.totalorder %v3557_v25, %v1411_v61  ;;  %v2566_v13 = vsel %vm1428_vm15, 1.0, %v5352_v39  ;;  %v4856_v44 = vsel %vm1428_vm15, inf, %v4710_v2 }
 0x441   :  { %v2565_v11 = vsel %vm1427_vm1, 1.0, %v5352_v39  ;;  %v4859_v19 = vsel %vm1427_vm1, inf, %v4714_v60  ;;  %v4862_v22 = vadd.f32 %v2566_v13, %v4719_v17  ;;  %1519 = vmin.xlane.f32.xlu1 %v4856_v44 }
 0x442   :  { %v4865_v57 = vadd.f32 %v2565_v11, %v4723_v30  ;;  %1517 = vmin.xlane.f32.xlu0 %v4859_v19 }
 0x443   :  { %v1380_v63 = vpop.xlane.xlu1 %1379 }
 0x444   :  { %v1378_v24 = vpop.xlane.xlu0 %1377  ;;  %v1414_v46 = vand.u32 127, %v1380_v63 }
 0x445   :  { %v1413_v4 = vand.u32 127, %v1378_v24 }
 0x446   :  { %vm1430_vm2 = vcmp.eq.s32.totalorder %v3557_v25, %v1414_v46 }
 0x447   :  { %vm1429_vm3 = vcmp.eq.s32.totalorder %v3557_v25, %v1413_v4  ;;  %v2568_v2 = vsel %vm1430_vm2, 1.0, %v5352_v39  ;;  %v4874_v17 = vsel %vm1430_vm2, inf, %v4728_v36 }
 0x448   :  { %v2567_v60 = vsel %vm1429_vm3, 1.0, %v5352_v39  ;;  %v4877_v30 = vsel %vm1429_vm3, inf, %v4732_v32  ;;  %v4880_v38 = vadd.f32 %v2568_v2, %v4737_v55  ;;  %1523 = vmin.xlane.f32.xlu1 %v4874_v17 }
 0x449   :  { %v4883_v61 = vadd.f32 %v2567_v60, %v4741_v47  ;;  %1521 = vmin.xlane.f32.xlu0 %v4877_v30 }
 0x44c   :  { %v1384_v13 = vpop.xlane.xlu1 %1383  ;;  %v1382_v63 = vpop.xlane.xlu0 %1381 }
 0x44d   :  { %v1416_v11 = vand.u32 127, %v1384_v13  ;;  %v1415_v24 = vand.u32 127, %v1382_v63 }
 0x44f   :  { %vm1432_vm4 = vcmp.eq.s32.totalorder %v3557_v25, %v1416_v11  ;;  %vm1431_vm5 = vcmp.eq.s32.totalorder %v3557_v25, %v1415_v24 }
 0x450   :  { %v2570_v36 = vsel %vm1432_vm4, 1.0, %v5352_v39  ;;  %v4891_v32 = vsel %vm1432_vm4, inf, %v4745_v51  ;;  %v2569_v47 = vsel %vm1431_vm5, 1.0, %v5352_v39  ;;  %v4899_v46 = vsel %vm1431_vm5, inf, %v4754_v43 }
 0x451   :  { %v4894_v55 = vadd.f32 %v2570_v36, %v4751_v54  ;;  %1527 = vmin.xlane.f32.xlu1 %v4891_v32  ;;  %v4902_v4 = vadd.f32 %v2569_v47, %v4759_v27  ;;  %1525 = vmin.xlane.f32.xlu0 %v4899_v46 }
 0x4b5   :  { %v1498_v2 = vpop.xlane.xlu0 %1497 }
 0x4b6   :  { %v1545_v60 = vand.u32 127, %v1498_v2 }
 0x4b8   :  { %v1500_v13 = vpop.xlane.xlu1 %1499  ;;  %vm1561_vm6 = vcmp.eq.s32.totalorder %v3557_v25, %v1545_v60 }
 0x4b9   :  { %v1546_v51 = vand.u32 127, %v1500_v13  ;;  %v2571_v54 = vsel %vm1561_vm6, 1.0, %v5352_v39  ;;  %v1502_v11 = vpop.xlane.xlu0 %1501  ;;  %v4908_v63 = vsel %vm1561_vm6, inf, %v4763_v14 }
 0x4ba   :  { %v4911_v43 = vadd.f32 %v2571_v54, %v4768_v33  ;;  %v1547_v24 = vand.u32 127, %v1502_v11  ;;  %1641 = vmin.xlane.f32.xlu0 %v4908_v63 }
 0x4bb   :  { %vm1562_vm0 = vcmp.eq.s32.totalorder %v3557_v25, %v1546_v51 }
 0x4bc   :  { %v2572_v27 = vsel %vm1562_vm0, 1.0, %v5352_v39  ;;  %v1504_v36 = vpop.xlane.xlu1 %1503  ;;  %vm1563_vm7 = vcmp.eq.s32.totalorder %v3557_v25, %v1547_v24  ;;  %v4918_v47 = vsel %vm1562_vm0, inf, %v4773_v53 }
 0x4bd   :  { %v4921_v2 = vadd.f32 %v2572_v27, %v4779_v34  ;;  %v1548_v14 = vand.u32 127, %v1504_v36  ;;  %v2573_v33 = vsel %vm1563_vm7, 1.0, %v5352_v39  ;;  %1643 = vmin.xlane.f32.xlu1 %v4918_v47  ;;  %v4926_v60 = vsel %vm1563_vm7, inf, %v4782_v10 }
 0x4be   :  { %v4929_v13 = vadd.f32 %v2573_v33, %v4785_v52  ;;  %v1506_v51 = vpop.xlane.xlu0 %1505  ;;  %1645 = vmin.xlane.f32.xlu0 %v4926_v60 }
 0x4bf   :  { %vm1564_vm8 = vcmp.eq.s32.totalorder %v3557_v25, %v1548_v14  ;;  %v1549_v53 = vand.u32 127, %v1506_v51 }
 0x4c0   :  { %v2574_v34 = vsel %vm1564_vm8, 1.0, %v5352_v39  ;;  %v1508_v54 = vpop.xlane.xlu1 %1507  ;;  %v4935_v11 = vsel %vm1564_vm8, inf, %v4791_v5 }
 0x4c1   :  { %v4938_v24 = vadd.f32 %v2574_v34, %v4794_v18  ;;  %v1550_v10 = vand.u32 127, %v1508_v54  ;;  %vm1565_vm9 = vcmp.eq.s32.totalorder %v3557_v25, %v1549_v53  ;;  %1647 = vmin.xlane.f32.xlu1 %v4935_v11 }
 0x4c2   :  { %v2575_v52 = vsel %vm1565_vm9, 1.0, %v5352_v39  ;;  %v1510_v27 = vpop.xlane.xlu0 %1509  ;;  %v4944_v36 = vsel %vm1565_vm9, inf, %v4800_v45 }
 0x4c3   :  { %vm1566_vm10 = vcmp.eq.s32.totalorder %v3557_v25, %v1550_v10  ;;  %v4948_v14 = vadd.f32 %v2575_v52, %v4804_v42  ;;  %v1551_v5 = vand.u32 127, %v1510_v27  ;;  %1649 = vmin.xlane.f32.xlu0 %v4944_v36 }
 0x4c4   :  { %v2576_v18 = vsel %vm1566_vm10, 1.0, %v5352_v39  ;;  %v1512_v33 = vpop.xlane.xlu1 %1511  ;;  %v4953_v51 = vsel %vm1566_vm10, inf, %v4809_v21 }
 0x4c5   :  { %v4956_v53 = vadd.f32 %v2576_v18, %v4812_v49  ;;  %v1552_v34 = vand.u32 127, %v1512_v33  ;;  %vm1567_vm11 = vcmp.eq.s32.totalorder %v3557_v25, %v1551_v5  ;;  %1651 = vmin.xlane.f32.xlu1 %v4953_v51 }
 0x4c6   :  { %v2577_v45 = vsel %vm1567_vm11, 1.0, %v5352_v39  ;;  %v1514_v42 = vpop.xlane.xlu0 %1513  ;;  %v4962_v54 = vsel %vm1567_vm11, inf, %v4818_v26 }
 0x4c7   :  { %vm1568_vm12 = vcmp.eq.s32.totalorder %v3557_v25, %v1552_v34  ;;  %v4966_v10 = vadd.f32 %v2577_v45, %v4822_v41  ;;  %v1553_v21 = vand.u32 127, %v1514_v42  ;;  %1653 = vmin.xlane.f32.xlu0 %v4962_v54 }
 0x4c8   :  { %v2578_v49 = vsel %vm1568_vm12, 1.0, %v5352_v39  ;;  %v1516_v52 = vpop.xlane.xlu1 %1515  ;;  %v4971_v27 = vsel %vm1568_vm12, inf, %v4827_v58 }
 0x4c9   :  { %v4974_v5 = vadd.f32 %v2578_v49, %v4830_v50  ;;  %v1554_v18 = vand.u32 127, %v1516_v52  ;;  %vm1569_vm13 = vcmp.eq.s32.totalorder %v3557_v25, %v1553_v21  ;;  %1655 = vmin.xlane.f32.xlu1 %v4971_v27 }
 0x4ca   :  { %v2579_v26 = vsel %vm1569_vm13, 1.0, %v5352_v39  ;;  %v4980_v41 = vsel %vm1569_vm13, inf, %v4836_v15 }
 0x4cb   :  { %vm1570_vm14 = vcmp.eq.s32.totalorder %v3557_v25, %v1554_v18  ;;  %v4984_v33 = vadd.f32 %v2579_v26, %v4840_v59  ;;  %1657 = vmin.xlane.f32.xlu0 %v4980_v41 }
 0x4cc   :  { %v2580_v58 = vsel %vm1570_vm14, 1.0, %v5352_v39  ;;  %v4989_v50 = vsel %vm1570_vm14, inf, %v4845_v31 }
 0x4cd   :  { %v4992_v34 = vadd.f32 %v2580_v58, %v4848_v48  ;;  %1659 = vmin.xlane.f32.xlu1 %v4989_v50 }
 0x4ce   :  { %v1520_v45 = vpop.xlane.xlu1 %1519 }
 0x4cf   :  { %v1518_v15 = vpop.xlane.xlu0 %1517  ;;  %v1556_v42 = vand.u32 127, %v1520_v45 }
 0x4d0   :  { %v1555_v21 = vand.u32 127, %v1518_v15 }
 0x4d1   :  { %vm1572_vm15 = vcmp.eq.s32.totalorder %v3557_v25, %v1556_v42 }
 0x4d2   :  { %vm1571_vm1 = vcmp.eq.s32.totalorder %v3557_v25, %v1555_v21  ;;  %v2582_v59 = vsel %vm1572_vm15, 1.0, %v5352_v39  ;;  %v5000_v31 = vsel %vm1572_vm15, inf, %v4856_v44 }
 0x4d3   :  { %v2581_v49 = vsel %vm1571_vm1, 1.0, %v5352_v39  ;;  %v5003_v48 = vsel %vm1571_vm1, inf, %v4859_v19  ;;  %v5006_v52 = vadd.f32 %v2582_v59, %v4862_v22  ;;  %1663 = vmin.xlane.f32.xlu1 %v5000_v31 }
 0x4d4   :  { %v5009_v18 = vadd.f32 %v2581_v49, %v4865_v57  ;;  %1661 = vmin.xlane.f32.xlu0 %v5003_v48 }
 0x4d5   :  { %v1524_v26 = vpop.xlane.xlu1 %1523 }
 0x4d6   :  { %v1522_v58 = vpop.xlane.xlu0 %1521  ;;  %v1558_v45 = vand.u32 127, %v1524_v26 }
 0x4d7   :  { %v1557_v15 = vand.u32 127, %v1522_v58 }
 0x4d8   :  { %vm1574_vm2 = vcmp.eq.s32.totalorder %v3557_v25, %v1558_v45 }
 0x4d9   :  { %vm1573_vm3 = vcmp.eq.s32.totalorder %v3557_v25, %v1557_v15  ;;  %v2584_v44 = vsel %vm1574_vm2, 1.0, %v5352_v39  ;;  %v5018_v22 = vsel %vm1574_vm2, inf, %v4874_v17 }
 0x4da   :  { %v2583_v19 = vsel %vm1573_vm3, 1.0, %v5352_v39  ;;  %v5021_v57 = vsel %vm1573_vm3, inf, %v4877_v30  ;;  %v5024_v42 = vadd.f32 %v2584_v44, %v4880_v38  ;;  %1667 = vmin.xlane.f32.xlu1 %v5018_v22 }
 0x4db   :  { %v5027_v21 = vadd.f32 %v2583_v19, %v4883_v61  ;;  %1665 = vmin.xlane.f32.xlu0 %v5021_v57 }
 0x4de   :  { %v1528_v59 = vpop.xlane.xlu1 %1527  ;;  %v1526_v26 = vpop.xlane.xlu0 %1525 }
 0x4df   :  { %v1560_v49 = vand.u32 127, %v1528_v59  ;;  %v1559_v58 = vand.u32 127, %v1526_v26 }
 0x4e1   :  { %vm1576_vm4 = vcmp.eq.s32.totalorder %v3557_v25, %v1560_v49  ;;  %vm1575_vm5 = vcmp.eq.s32.totalorder %v3557_v25, %v1559_v58 }
 0x4e2   :  { %v2586_v17 = vsel %vm1576_vm4, 1.0, %v5352_v39  ;;  %v5035_v30 = vsel %vm1576_vm4, inf, %v4891_v32  ;;  %v2585_v61 = vsel %vm1575_vm5, 1.0, %v5352_v39  ;;  %v5043_v45 = vsel %vm1575_vm5, inf, %v4899_v46 }
 0x4e3   :  { %v5038_v38 = vadd.f32 %v2586_v17, %v4894_v55  ;;  %1671 = vmin.xlane.f32.xlu1 %v5035_v30  ;;  %v5046_v15 = vadd.f32 %v2585_v61, %v4902_v4  ;;  %1669 = vmin.xlane.f32.xlu0 %v5043_v45 }
 0x547   :  { %v1642_v44 = vpop.xlane.xlu0 %1641 }
 0x548   :  { %v1689_v19 = vand.u32 127, %v1642_v44 }
 0x54a   :  { %v1644_v59 = vpop.xlane.xlu1 %1643  ;;  %vm1705_vm6 = vcmp.eq.s32.totalorder %v3557_v25, %v1689_v19 }
 0x54b   :  { %v1690_v32 = vand.u32 127, %v1644_v59  ;;  %v2587_v55 = vsel %vm1705_vm6, 1.0, %v5352_v39  ;;  %v1646_v49 = vpop.xlane.xlu0 %1645  ;;  %v1769_v26 = vsel %vm1705_vm6, inf, %v4908_v63 }
 0x54c   :  { %v5053_v58 = vadd.f32 %v2587_v55, %v4911_v43  ;;  %v1691_v46 = vand.u32 127, %v1646_v49  ;;  %1785 = vmin.xlane.f32.xlu0 %v1769_v26 }
 0x54d   :  { %vm1706_vm0 = vcmp.eq.s32.totalorder %v3557_v25, %v1690_v32 }
 0x54e   :  { %v2588_v4 = vsel %vm1706_vm0, 1.0, %v5352_v39  ;;  %v1648_v17 = vpop.xlane.xlu1 %1647  ;;  %vm1707_vm7 = vcmp.eq.s32.totalorder %v3557_v25, %v1691_v46  ;;  %v1770_v61 = vsel %vm1706_vm0, inf, %v4918_v47 }
 0x54f   :  { %v5060_v44 = vadd.f32 %v2588_v4, %v4921_v2  ;;  %v1692_v19 = vand.u32 127, %v1648_v17  ;;  %v2589_v63 = vsel %vm1707_vm7, 1.0, %v5352_v39  ;;  %1787 = vmin.xlane.f32.xlu1 %v1770_v61  ;;  %v1771_v43 = vsel %vm1707_vm7, inf, %v4926_v60 }
 0x550   :  { %v5065_v59 = vadd.f32 %v2589_v63, %v4929_v13  ;;  %v1650_v32 = vpop.xlane.xlu0 %1649  ;;  %1789 = vmin.xlane.f32.xlu0 %v1771_v43 }
 0x551   :  { %vm1708_vm8 = vcmp.eq.s32.totalorder %v3557_v25, %v1692_v19  ;;  %v1693_v55 = vand.u32 127, %v1650_v32 }
 0x552   :  { %v2590_v49 = vsel %vm1708_vm8, 1.0, %v5352_v39  ;;  %v1652_v47 = vpop.xlane.xlu1 %1651  ;;  %v1772_v2 = vsel %vm1708_vm8, inf, %v4935_v11 }
 0x553   :  { %v5071_v26 = vadd.f32 %v2590_v49, %v4938_v24  ;;  %v1694_v46 = vand.u32 127, %v1652_v47  ;;  %vm1709_vm9 = vcmp.eq.s32.totalorder %v3557_v25, %v1693_v55  ;;  %1791 = vmin.xlane.f32.xlu1 %v1772_v2 }
 0x554   :  { %v2591_v60 = vsel %vm1709_vm9, 1.0, %v5352_v39  ;;  %v1654_v13 = vpop.xlane.xlu0 %1653  ;;  %v1773_v4 = vsel %vm1709_vm9, inf, %v4944_v36 }
 0x555   :  { %vm1710_vm10 = vcmp.eq.s32.totalorder %v3557_v25, %v1694_v46  ;;  %v5078_v17 = vadd.f32 %v2591_v60, %v4948_v14  ;;  %v1695_v61 = vand.u32 127, %v1654_v13  ;;  %1793 = vmin.xlane.f32.xlu0 %v1773_v4 }
 0x556   :  { %v2592_v11 = vsel %vm1710_vm10, 1.0, %v5352_v39  ;;  %v1656_v24 = vpop.xlane.xlu1 %1655  ;;  %v1774_v19 = vsel %vm1710_vm10, inf, %v4953_v51 }
 0x557   :  { %v5083_v63 = vadd.f32 %v2592_v11, %v4956_v53  ;;  %v1696_v43 = vand.u32 127, %v1656_v24  ;;  %vm1711_vm11 = vcmp.eq.s32.totalorder %v3557_v25, %v1695_v61  ;;  %1795 = vmin.xlane.f32.xlu1 %v1774_v19 }
 0x558   :  { %v2593_v36 = vsel %vm1711_vm11, 1.0, %v5352_v39  ;;  %v1658_v32 = vpop.xlane.xlu0 %1657  ;;  %v1775_v14 = vsel %vm1711_vm11, inf, %v4962_v54 }
 0x559   :  { %vm1712_vm12 = vcmp.eq.s32.totalorder %v3557_v25, %v1696_v43  ;;  %v5090_v55 = vadd.f32 %v2593_v36, %v4966_v10  ;;  %v1697_v49 = vand.u32 127, %v1658_v32  ;;  %1797 = vmin.xlane.f32.xlu0 %v1775_v14 }
 0x55a   :  { %v2594_v51 = vsel %vm1712_vm12, 1.0, %v5352_v39  ;;  %v1660_v53 = vpop.xlane.xlu1 %1659  ;;  %v1776_v47 = vsel %vm1712_vm12, inf, %v4971_v27 }
 0x55b   :  { %v5095_v2 = vadd.f32 %v2594_v51, %v4974_v5  ;;  %v1698_v46 = vand.u32 127, %v1660_v53  ;;  %vm1713_vm13 = vcmp.eq.s32.totalorder %v3557_v25, %v1697_v49  ;;  %1799 = vmin.xlane.f32.xlu1 %v1776_v47 }
 0x55c   :  { %v2595_v54 = vsel %vm1713_vm13, 1.0, %v5352_v39  ;;  %v1777_v60 = vsel %vm1713_vm13, inf, %v4980_v41 }
 0x55d   :  { %vm1714_vm14 = vcmp.eq.s32.totalorder %v3557_v25, %v1698_v46  ;;  %v5102_v10 = vadd.f32 %v2595_v54, %v4984_v33  ;;  %1801 = vmin.xlane.f32.xlu0 %v1777_v60 }
 0x55e   :  { %v2596_v13 = vsel %vm1714_vm14, 1.0, %v5352_v39  ;;  %v1778_v27 = vsel %vm1714_vm14, inf, %v4989_v50 }
 0x55f   :  { %v5107_v5 = vadd.f32 %v2596_v13, %v4992_v34  ;;  %1803 = vmin.xlane.f32.xlu1 %v1778_v27 }
 0x560   :  { %v1664_v4 = vpop.xlane.xlu1 %1663 }
 0x561   :  { %v1662_v61 = vpop.xlane.xlu0 %1661  ;;  %v1700_v11 = vand.u32 127, %v1664_v4 }
 0x562   :  { %v1699_v24 = vand.u32 127, %v1662_v61 }
 0x563   :  { %vm1716_vm15 = vcmp.eq.s32.totalorder %v3557_v25, %v1700_v11 }
 0x564   :  { %vm1715_vm1 = vcmp.eq.s32.totalorder %v3557_v25, %v1699_v24  ;;  %v2598_v41 = vsel %vm1716_vm15, 1.0, %v5352_v39  ;;  %v1780_v19 = vsel %vm1716_vm15, inf, %v5000_v31 }
 0x565   :  { %v2597_v33 = vsel %vm1715_vm1, 1.0, %v5352_v39  ;;  %v1779_v50 = vsel %vm1715_vm1, inf, %v5003_v48  ;;  %v5116_v34 = vadd.f32 %v2598_v41, %v5006_v52  ;;  %1807 = vmin.xlane.f32.xlu1 %v1780_v19 }
 0x566   :  { %v5119_v43 = vadd.f32 %v2597_v33, %v5009_v18  ;;  %1805 = vmin.xlane.f32.xlu0 %v1779_v50 }
 0x567   :  { %v1668_v36 = vpop.xlane.xlu1 %1667 }
 0x568   :  { %v1666_v32 = vpop.xlane.xlu0 %1665  ;;  %v1702_v14 = vand.u32 127, %v1668_v36 }
 0x569   :  { %v1701_v49 = vand.u32 127, %v1666_v32 }
 0x56a   :  { %vm1718_vm2 = vcmp.eq.s32.totalorder %v3557_v25, %v1702_v14 }
 0x56b   :  { %vm1717_vm3 = vcmp.eq.s32.totalorder %v3557_v25, %v1701_v49  ;;  %v2600_v31 = vsel %vm1718_vm2, 1.0, %v5352_v39  ;;  %v1782_v52 = vsel %vm1718_vm2, inf, %v5018_v22 }
 0x56c   :  { %v2599_v48 = vsel %vm1717_vm3, 1.0, %v5352_v39  ;;  %v1781_v51 = vsel %vm1717_vm3, inf, %v5021_v57  ;;  %v5128_v18 = vadd.f32 %v2600_v31, %v5024_v42  ;;  %1811 = vmin.xlane.f32.xlu1 %v1782_v52 }
 0x56d   :  { %v5131_v53 = vadd.f32 %v2599_v48, %v5027_v21  ;;  %1809 = vmin.xlane.f32.xlu0 %v1781_v51 }
 0x570   :  { %v1672_v47 = vpop.xlane.xlu1 %1671  ;;  %v1670_v54 = vpop.xlane.xlu0 %1669 }
 0x571   :  { %v1704_v46 = vand.u32 127, %v1672_v47  ;;  %v1703_v60 = vand.u32 127, %v1670_v54 }
 0x573   :  { %vm1720_vm4 = vcmp.eq.s32.totalorder %v3557_v25, %v1704_v46  ;;  %vm1719_vm5 = vcmp.eq.s32.totalorder %v3557_v25, %v1703_v60 }
 0x574   :  { %v2602_v13 = vsel %vm1720_vm4, 1.0, %v5352_v39  ;;  %v1784_v22 = vsel %vm1720_vm4, inf, %v5035_v30  ;;  %v2601_v42 = vsel %vm1719_vm5, 1.0, %v5352_v39  ;;  %v1783_v21 = vsel %vm1719_vm5, inf, %v5043_v45 }
 0x575   :  { %v5138_v57 = vadd.f32 %v2602_v13, %v5038_v38  ;;  %1815 = vmin.xlane.f32.xlu1 %v1784_v22  ;;  %v5143_v27 = vadd.f32 %v2601_v42, %v5046_v15  ;;  %1813 = vmin.xlane.f32.xlu0 %v1783_v21 }
 0x5d9   :  { %v1786_v4 = vpop.xlane.xlu0 %1785 }
 0x5da   :  { %v1833_v61 = vand.u32 127, %v1786_v4 }
 0x5dc   :  { %v1788_v11 = vpop.xlane.xlu1 %1787  ;;  %vm1849_vm6 = vcmp.eq.s32.totalorder %v3557_v25, %v1833_v61 }
 0x5dd   :  { %v1834_v24 = vand.u32 127, %v1788_v11  ;;  %v2603_v30 = vsel %vm1849_vm6, 1.0, %v5352_v39  ;;  %v1790_v41 = vpop.xlane.xlu0 %1789  ;;  %vm5387_vm6 = vmmov 0  }
 0x5de   :  { %v1835_v38 = vand.u32 127, %v1790_v41  ;;  %v5148_v33 = vadd.f32 %v2603_v30, %v5053_v58 }
 0x5df   :  { %vm1850_vm0 = vcmp.eq.s32.totalorder %v3557_v25, %v1834_v24 }
 0x5e0   :  { %v2604_v45 = vsel %vm1850_vm0, 1.0, %v5352_v39  ;;  %v1792_v15 = vpop.xlane.xlu1 %1791  ;;  %vm1851_vm7 = vcmp.eq.s32.totalorder %v3557_v25, %v1835_v38  ;;  %1929 = vxpose.xlu0.b32.start [1/16] %v5148_v33, 128  ;;  %v2163_v19 = vmul.f32 %v3840_v9, %v5148_v33  ;;  %vm2159_vm0 = vcmask 1040384  }
 0x5e1   :  { %v1836_v50 = vand.u32 127, %v1792_v15  ;;  %v2605_v36 = vsel %vm1851_vm7, 1.0, %v5352_v39  ;;  %v5158_v32 = vadd.f32 %v2604_v45, %v5060_v44  ;;  %vm2414_vm7 = vcmp.eq.s32.totalorder %v3557_v25, 0 }
 0x5e2   :  { %v1794_v58 = vpop.xlane.xlu0 %1793  ;;  %v5161_v14 = vadd.f32 %v2605_v36, %v5065_v59  ;;  %v2179_v52 = vmul.f32 %v2163_v19, %v2163_v19 }
 0x5e3   :  { %vm1852_vm8 = vcmp.eq.s32.totalorder %v3557_v25, %v1836_v50  ;;  %v1837_v49 = vand.u32 127, %v1794_v58  ;;  %v2164_v31 = vmul.f32 %v3947_v8, %v5158_v32 }
 0x5e4   :  { %v2606_v48 = vsel %vm1852_vm8, 1.0, %v5352_v39  ;;  %v1796_v9 = vpop.xlane.xlu1 %1795  ;;  %1930 = vxpose.xlu0.b32.cont [2/16] %v5158_v32, 128  ;;  %v2165_v44 = vmul.f32 %v3883_v56, %v5161_v14  ;;  %vm2416_vm8 = vcmp.eq.s32.totalorder %v3557_v25, 1 }
 0x5e5   :  { %v5171_v51 = vadd.f32 %v2606_v48, %v5071_v26  ;;  %v1838_v59 = vand.u32 127, %v1796_v9  ;;  %vm1853_vm9 = vcmp.eq.s32.totalorder %v3557_v25, %v1837_v49  ;;  %v2180_v47 = vmul.f32 %v2164_v31, %v2164_v31 }
 0x5e6   :  { %v2607_v46 = vsel %vm1853_vm9, 1.0, %v5352_v39  ;;  %v1798_v54 = vpop.xlane.xlu0 %1797  ;;  %v2181_v42 = vmul.f32 %v2165_v44, %v2165_v44  ;;  %vm2419_vm9 = vcmp.eq.s32.totalorder %v3557_v25, 2 }
 0x5e7   :  { %v2166_v8 = vmul.f32 %v3897_v28, %v5171_v51  ;;  %vm1854_vm10 = vcmp.eq.s32.totalorder %v3557_v25, %v1838_v59  ;;  %v5179_v60 = vadd.f32 %v2607_v46, %v5078_v17  ;;  %v1839_v13 = vand.u32 127, %v1798_v54 }
 0x5e8   :  { %v2608_v56 = vsel %vm1854_vm10, 1.0, %v5352_v39  ;;  %v1800_v26 = vpop.xlane.xlu1 %1799  ;;  %v3072_v22 = vpack.c.bf16 %v2180_v47, %v2179_v52  ;;  %1931 = vxpose.xlu0.b32.cont [3/16] %v5161_v14, 128  ;;  %vm2422_vm10 = vcmp.eq.s32.totalorder %v3557_v25, 3 }
 0x5e9   :  { %v5184_v21 = vadd.f32 %v2608_v56, %v5083_v63  ;;  %v2167_v4 = vmul.f32 %v3958_v37, %v5179_v60  ;;  %v1840_v28 = vand.u32 127, %v1800_v26  ;;  %vm1855_vm11 = vcmp.eq.s32.totalorder %v3557_v25, %v1839_v13 }
 0x5ea   :  { %v2609_v17 = vsel %vm1855_vm11, 1.0, %v5352_v39  ;;  %3073 = vmatpush3.bf16.msra.mxu1 %v3072_v22  ;;  %v1802_v61 = vpop.xlane.xlu0 %1801  ;;  %v2182_v11 = vmul.f32 %v2166_v8, %v2166_v8 }
 0x5eb   :  { %v2168_v24 = vmul.f32 %v3963_v1, %v5184_v21  ;;  %vm1856_vm12 = vcmp.eq.s32.totalorder %v3557_v25, %v1840_v28  ;;  %v5194_v30 = vadd.f32 %v2609_v17, %v5090_v55  ;;  %3074 = vmatprep.subr.bf16.mxu1 %v3264_v0  ;;  %v1841_v63 = vand.u32 127, %v1802_v61 }
 0x5ec   :  { %v2610_v37 = vsel %vm1856_vm12, 1.0, %v5352_v39  ;;  %v1804_v41 = vpop.xlane.xlu1 %1803  ;;  %v3075_v38 = vpack.c.bf16 %v2182_v11, %v2181_v42  ;;  %1932 = vxpose.xlu0.b32.cont [4/16] %v5171_v51, 128  ;;  %v2183_v45 = vmul.f32 %v2167_v4, %v2167_v4 }
 0x5ed   :  { %v5200_v15 = vadd.f32 %v2610_v37, %v5095_v2  ;;  %v2169_v1 = vmul.f32 %v4005_v12, %v5194_v30  ;;  %v1842_v19 = vand.u32 127, %v1804_v41  ;;  %vm1857_vm13 = vcmp.eq.s32.totalorder %v3557_v25, %v1841_v63 }
 0x5ee   :  { %v2611_v55 = vsel %vm1857_vm13, 1.0, %v5352_v39  ;;  %3076 = vmatpush3.bf16.msra.mxu1 %v3075_v38  ;;  %v2184_v50 = vmul.f32 %v2168_v24, %v2168_v24 }
 0x5ef   :  { %v2170_v36 = vmul.f32 %v4019_v29, %v5200_v15  ;;  %vm1858_vm14 = vcmp.eq.s32.totalorder %v3557_v25, %v1842_v19  ;;  %v5210_v58 = vadd.f32 %v2611_v55, %v5102_v10  ;;  %3077 = vmatprep.subr.bf16.mxu1 %v3264_v0  ;;  %v2185_v2 = vmul.f32 %v2169_v1, %v2169_v1 }
 0x5f0   :  { %v2612_v12 = vsel %vm1858_vm14, 1.0, %v5352_v39  ;;  %v3078_v49 = vpack.c.bf16 %v2184_v50, %v2183_v45  ;;  %1933 = vxpose.xlu0.b32.cont [5/16] %v5179_v60, 128 }
 0x5f1   :  { %v5216_v31 = vadd.f32 %v2612_v12, %v5107_v5  ;;  %v2171_v48 = vmul.f32 %v4033_v7, %v5210_v58  ;;  %v2186_v29 = vmul.f32 %v2170_v36, %v2170_v36 }
 0x5f2   :  { %v1808_v52 = vpop.xlane.xlu1 %1807  ;;  %3079 = vmatpush3.bf16.msra.mxu1 %v3078_v49  ;;  %v1913_v49 = vld [vmem:[#allocation6] sm:$0xff] }
 0x5f3   :  { %v1806_v9 = vpop.xlane.xlu0 %1805  ;;  %v2172_v10 = vmul.f32 %v4040_v62, %v5216_v31  ;;  %v1844_v44 = vand.u32 127, %v1808_v52  ;;  %3080 = vmatprep.subr.bf16.mxu1 %v3264_v0  ;;  %v3081_v47 = vpack.c.bf16 %v2186_v29, %v2185_v2  ;;  %v2187_v46 = vmul.f32 %v2171_v48, %v2171_v48  ;;  %v1914_v29 = vld [vmem:[#allocation6 + $0x8] sm:$0xff] }
 0x5f4   :  { %v1843_v59 = vand.u32 127, %v1806_v9  ;;  %1934 = vxpose.xlu0.b32.cont [6/16] %v5184_v21, 128  ;;  %v1977_v52 = vsub.f32 1.0, %v1913_v49 }
 0x5f5   :  { %vm1860_vm15 = vcmp.eq.s32.totalorder %v3557_v25, %v1844_v44  ;;  %v2188_v7 = vmul.f32 %v2172_v10, %v2172_v10  ;;  %v1978_v10 = vsub.f32 1.0, %v1914_v29 }
 0x5f6   :  { %vm1859_vm1 = vcmp.eq.s32.totalorder %v3557_v25, %v1843_v59  ;;  %v2614_v5 = vsel %vm1860_vm15, 1.0, %v5352_v39  ;;  %3082 = vmatpush3.bf16.msra.mxu1 %v3081_v47 }
 0x5f7   :  { %v2613_v54 = vsel %vm1859_vm1, 1.0, %v5352_v39  ;;  %v5229_v62 = vadd.f32 %v2614_v5, %v5116_v34  ;;  %3083 = vmatprep.subr.bf16.mxu1 %v3264_v0  ;;  %v3084_v13 = vpack.c.bf16 %v2188_v7, %v2187_v46  ;;  %v1915_v7 = vld [vmem:[#allocation6 + $0x10] sm:$0xff] }
 0x5f8   :  { %v5232_v8 = vadd.f32 %v2613_v54, %v5119_v43  ;;  %1935 = vxpose.xlu0.b32.cont [7/16] %v5194_v30, 128  ;;  %v1916_v54 = vld [vmem:[#allocation6 + $0x18] sm:$0xff] }
 0x5f9   :  { %v1812_v56 = vpop.xlane.xlu1 %1811  ;;  %v2174_v22 = vmul.f32 %v4067_v40, %v5229_v62 }
 0x5fa   :  { %v1810_v26 = vpop.xlane.xlu0 %1809  ;;  %v2173_v42 = vmul.f32 %v4058_v6, %v5232_v8  ;;  %v1846_v4 = vand.u32 127, %v1812_v56  ;;  %3085 = vmatpush3.bf16.msra.mxu1 %v3084_v13  ;;  %v1979_v56 = vsub.f32 1.0, %v1915_v7 }
 0x5fb   :  { %v1845_v28 = vand.u32 127, %v1810_v26  ;;  %3086 = vmatprep.subr.bf16.mxu1 %v3264_v0  ;;  %v2190_v43 = vmul.f32 %v2174_v22, %v2174_v22  ;;  %v1980_v22 = vsub.f32 1.0, %v1916_v54 }
 0x5fc   :  { %vm1862_vm2 = vcmp.eq.s32.totalorder %v3557_v25, %v1846_v4  ;;  %v2189_v34 = vmul.f32 %v2173_v42, %v2173_v42  ;;  %1936 = vxpose.xlu0.b32.cont [8/16] %v5200_v15, 128 }
 0x5fd   :  { %vm1861_vm3 = vcmp.eq.s32.totalorder %v3557_v25, %v1845_v28  ;;  %v2616_v17 = vsel %vm1862_vm2, 1.0, %v5352_v39 }
 0x5fe   :  { %v2615_v61 = vsel %vm1861_vm3, 1.0, %v5352_v39  ;;  %v5247_v40 = vadd.f32 %v2616_v17, %v5128_v18  ;;  %v3087_v11 = vpack.c.bf16 %v2190_v43, %v2189_v34  ;;  %v1917_v34 = vld [vmem:[#allocation6 + $0x20] sm:$0xff]  ;;  %v1918_v17 = vld [vmem:[#allocation6 + $0x28] sm:$0xff] }
 0x5ff   :  { %v5250_v6 = vadd.f32 %v2615_v61, %v5131_v53 }
 0x600   :  { %v2176_v24 = vmul.f32 %v4093_v23, %v5247_v40  ;;  %3088 = vmatpush3.bf16.msra.mxu1 %v3087_v11  ;;  %1937 = vxpose.xlu0.b32.cont [9/16] %v5210_v58, 128  ;;  %v1981_v11 = vsub.f32 1.0, %v1917_v34 }
 0x601   :  { %v2175_v63 = vmul.f32 %v4088_v16, %v5250_v6  ;;  %3089 = vmatprep.subr.bf16.mxu1 %v3264_v0 }
 0x602   :  { %v1816_v37 = vpop.xlane.xlu1 %1815  ;;  %v1814_v38 = vpop.xlane.xlu0 %1813  ;;  %v2192_v45 = vmul.f32 %v2176_v24, %v2176_v24  ;;  %v1982_v24 = vsub.f32 1.0, %v1918_v17 }
 0x603   :  { %v1848_v41 = vand.u32 127, %v1816_v37  ;;  %v2191_v18 = vmul.f32 %v2175_v63, %v2175_v63  ;;  %v1847_v1 = vand.u32 127, %v1814_v38 }
 0x604   :  { %1938 = vxpose.xlu0.b32.cont [10/16] %v5216_v31, 128 }
 0x605   :  { %vm1864_vm4 = vcmp.eq.s32.totalorder %v3557_v25, %v1848_v41  ;;  %v3090_v53 = vpack.c.bf16 %v2192_v45, %v2191_v18  ;;  %vm1863_vm5 = vcmp.eq.s32.totalorder %v3557_v25, %v1847_v1  ;;  %v1919_v18 = vld [vmem:[#allocation6 + $0x30] sm:$0xff]  ;;  %v1920_v1 = vld [vmem:[#allocation6 + $0x38] sm:$0xff] }
 0x606   :  { %v2618_v19 = vsel %vm1864_vm4, 1.0, %v5352_v39  ;;  %v2617_v23 = vsel %vm1863_vm5, 1.0, %v5352_v39 }
 0x607   :  { %v5263_v16 = vadd.f32 %v2618_v19, %v5138_v57  ;;  %3091 = vmatpush3.bf16.msra.mxu1 %v3090_v53  ;;  %v5267_v55 = vadd.f32 %v2617_v23, %v5143_v27  ;;  %v1983_v19 = vsub.f32 1.0, %v1919_v18  ;;  %v1984_v23 = vsub.f32 1.0, %v1920_v1 }
 0x608   :  { %3092 = vmatprep.subr.bf16.mxu1 %v3264_v0  ;;  %1939 = vxpose.xlu0.b32.cont [11/16] %v5232_v8, 128 }
 0x609   :  { %v2178_v50 = vmul.f32 %v4112_v20, %v5263_v16  ;;  %v2177_v36 = vmul.f32 %v4110_v3, %v5267_v55  ;;  %v2155_v3 = vpop.f32.mrb[16].mxu0 }
 0x60a   :  { %v2160_v20 = vsel %vm2159_vm0, %v2155_v3, 0.0  ;;  %v2861_v27 = vpop.f32.mrb[17].mxu0 }
 0x60b   :  { %v2194_v2 = vmul.f32 %v2178_v50, %v2178_v50  ;;  %v2193_v12 = vmul.f32 %v2177_v36, %v2177_v36  ;;  %2161 = vadd.xlane.f32.xlu1 %v2160_v20  ;;  %v1922_v20 = vld [vmem:[#allocation6 + $0x48] sm:$0xff] }
 0x60c   :  { %1940 = vxpose.xlu0.b32.cont [12/16] %v5229_v62, 128 }
 0x60d   :  { %v3093_v57 = vpack.c.bf16 %v2194_v2, %v2193_v12 }
 0x60f   :  { %3094 = vmatpush3.bf16.msra.mxu1 %v3093_v57  ;;  %v1921_v57 = vld [vmem:[#allocation6 + $0x40] sm:$0xff] }
 0x610   :  { %3119 = vmatprep.subr.bf16.mxu1 %v3264_v0  ;;  %1941 = vxpose.xlu0.b32.cont [13/16] %v5250_v6, 128  ;;  %v1985_v49 = vsub.f32 1.0, %v1921_v57 }
 0x612   :  { %2895 = vmatmul.mubr.f32.vlgmr.msra.gmra.mrb[2].mxu1 %v5351_v35 }
 0x613   :  { %2964 = vmatprep.mubr.msk.f32.mxu1 %vm5387_vm6, %v5352_v39 }
 0x614   :  { %1942 = vxpose.xlu0.b32.cont [14/16] %v5247_v40, 128 }
 0x618   :  { %1943 = vxpose.xlu0.b32.cont [15/16] %v5267_v55, 128 }
 0x61c   :  { %1944 = vxpose.xlu0.b32.end [16/16] %v5263_v16, 128 }
 0x660   :  { %v1945_v48 = vpop.trf.xlu0 }
 0x661   :  { %v1961_v9 = vmax.f32 %v5148_v33, %v1945_v48  ;;  %v1986_v48 = vsub.f32 1.0, %v1922_v20 }
 0x663   :  { %v1993_v59 = vmul.f32 %v1977_v52, %v1961_v9 }
 0x664   :  { %v1946_v39 = vpop.trf.xlu0 }
 0x665   :  { %v1962_v44 = vmax.f32 %v5158_v32, %v1946_v39  ;;  %v1923_v39 = vld [vmem:[#allocation6 + $0x50] sm:$0xff] }
 0x667   :  { %v1994_v47 = vmul.f32 %v1978_v10, %v1962_v44  ;;  %v3120_v46 = vpack.c.bf16 %v1962_v44, %v1961_v9 }
 0x668   :  { %v1947_v5 = vpop.trf.xlu0 }
 0x669   :  { %v3096_v13 = vpack.c.bf16 %v1994_v47, %v1993_v59  ;;  %3121 = vmatpush3.bf16.msra.mxu1 %v3120_v46  ;;  %v1963_v26 = vmax.f32 %v5161_v14, %v1947_v5  ;;  %v1924_v59 = vld [vmem:[#allocation6 + $0x58] sm:$0xff]  ;;  %v1987_v46 = vsub.f32 1.0, %v1923_v39 }
 0x66a   :  { %3122 = vmatprep.subr.bf16.mxu1 %v3264_v0  ;;  %v1988_v7 = vsub.f32 1.0, %v1924_v59 }
 0x66b   :  { %3097 = vmatpush3.bf16.msra.mxu0 %v3096_v13  ;;  %v1995_v42 = vmul.f32 %v1979_v56, %v1963_v26 }
 0x66c   :  { %v1948_v33 = vpop.trf.xlu0  ;;  %3098 = vmatprep.subr.bf16.mxu0 %v3264_v0 }
 0x66d   :  { %v1964_v32 = vmax.f32 %v5171_v51, %v1948_v33  ;;  %v1926_v33 = vld [vmem:[#allocation6 + $0x68] sm:$0xff] }
 0x66f   :  { %v1996_v4 = vmul.f32 %v1980_v22, %v1964_v32  ;;  %v3123_v28 = vpack.c.bf16 %v1964_v32, %v1963_v26  ;;  %v1925_v26 = vld [vmem:[#allocation6 + $0x60] sm:$0xff] }
 0x670   :  { %v1949_v43 = vpop.trf.xlu0 }
 0x671   :  { %v3099_v61 = vpack.c.bf16 %v1996_v4, %v1995_v42  ;;  %3124 = vmatpush3.bf16.msra.mxu1 %v3123_v28  ;;  %v1965_v14 = vmax.f32 %v5179_v60, %v1949_v43  ;;  %v1989_v42 = vsub.f32 1.0, %v1925_v26  ;;  %v1990_v4 = vsub.f32 1.0, %v1926_v33 }
 0x672   :  { %3125 = vmatprep.subr.bf16.mxu1 %v3264_v0 }
 0x673   :  { %3100 = vmatpush3.bf16.msra.mxu0 %v3099_v61  ;;  %v1997_v37 = vmul.f32 %v1981_v11, %v1965_v14  ;;  %v1927_v61 = vld [vmem:[#allocation6 + $0x70] sm:$0xff] }
 0x674   :  { %v1950_v63 = vpop.trf.xlu0  ;;  %3101 = vmatprep.subr.bf16.mxu0 %v3264_v0 }
 0x675   :  { %v1966_v51 = vmax.f32 %v5184_v21, %v1950_v63  ;;  %v1991_v63 = vsub.f32 1.0, %v1927_v61 }
 0x677   :  { %v1998_v41 = vmul.f32 %v1982_v24, %v1966_v51  ;;  %v3126_v38 = vpack.c.bf16 %v1966_v51, %v1965_v14  ;;  %v1928_v14 = vld [vmem:[#allocation6 + $0x78] sm:$0xff] }
 0x678   :  { %v1951_v45 = vpop.trf.xlu0  ;;  %v1992_v51 = vsub.f32 1.0, %v1928_v14 }
 0x679   :  { %v3102_v53 = vpack.c.bf16 %v1998_v41, %v1997_v37  ;;  %3127 = vmatpush3.bf16.msra.mxu1 %v3126_v38  ;;  %v1967_v60 = vmax.f32 %v5194_v30, %v1951_v45 }
 0x67a   :  { %3128 = vmatprep.subr.bf16.mxu1 %v3264_v0 }
 0x67b   :  { %3103 = vmatpush3.bf16.msra.mxu0 %v3102_v53  ;;  %v1999_v36 = vmul.f32 %v1983_v19, %v1967_v60 }
 0x67c   :  { %v1952_v50 = vpop.trf.xlu0  ;;  %3104 = vmatprep.subr.bf16.mxu0 %v3264_v0 }
 0x67d   :  { %v1968_v21 = vmax.f32 %v5200_v15, %v1952_v50 }
 0x67f   :  { %v2000_v2 = vmul.f32 %v1984_v23, %v1968_v21  ;;  %v3129_v12 = vpack.c.bf16 %v1968_v21, %v1967_v60 }
 0x680   :  { %v1953_v3 = vpop.trf.xlu0 }
 0x681   :  { %v3105_v27 = vpack.c.bf16 %v2000_v2, %v1999_v36  ;;  %3130 = vmatpush3.bf16.msra.mxu1 %v3129_v12  ;;  %v1969_v30 = vmax.f32 %v5210_v58, %v1953_v3 }
 0x682   :  { %3131 = vmatprep.subr.bf16.mxu1 %v3264_v0 }
 0x683   :  { %3106 = vmatpush3.bf16.msra.mxu0 %v3105_v27  ;;  %v2001_v52 = vmul.f32 %v1985_v49, %v1969_v30 }
 0x684   :  { %v1954_v29 = vpop.trf.xlu0  ;;  %3107 = vmatprep.subr.bf16.mxu0 %v3264_v0 }
 0x685   :  { %v1970_v15 = vmax.f32 %v5216_v31, %v1954_v29 }
 0x687   :  { %v2002_v9 = vmul.f32 %v1986_v48, %v1970_v15  ;;  %v3132_v10 = vpack.c.bf16 %v1970_v15, %v1969_v30 }
 0x688   :  { %v1955_v44 = vpop.trf.xlu0 }
 0x689   :  { %v3108_v47 = vpack.c.bf16 %v2002_v9, %v2001_v52  ;;  %3133 = vmatpush3.bf16.msra.mxu1 %v3132_v10  ;;  %v1971_v58 = vmax.f32 %v5232_v8, %v1955_v44 }
 0x68a   :  { %3134 = vmatprep.subr.bf16.mxu1 %v3264_v0 }
 0x68b   :  { %3109 = vmatpush3.bf16.msra.mxu0 %v3108_v47  ;;  %v2003_v54 = vmul.f32 %v1987_v46, %v1971_v58 }
 0x68c   :  { %v1956_v5 = vpop.trf.xlu0  ;;  %3110 = vmatprep.subr.bf16.mxu0 %v3264_v0 }
 0x68d   :  { %v1972_v31 = vmax.f32 %v5229_v62, %v1956_v5 }
 0x68f   :  { %v2004_v13 = vmul.f32 %v1988_v7, %v1972_v31  ;;  %v3135_v56 = vpack.c.bf16 %v1972_v31, %v1971_v58 }
 0x690   :  { %v1957_v22 = vpop.trf.xlu0 }
 0x691   :  { %v3111_v32 = vpack.c.bf16 %v2004_v13, %v2003_v54  ;;  %3136 = vmatpush3.bf16.msra.mxu1 %v3135_v56  ;;  %v1973_v8 = vmax.f32 %v5250_v6, %v1957_v22 }
 0x692   :  { %3137 = vmatprep.subr.bf16.mxu1 %v3264_v0 }
 0x693   :  { %3112 = vmatpush3.bf16.msra.mxu0 %v3111_v32  ;;  %v2005_v34 = vmul.f32 %v1989_v42, %v1973_v8 }
 0x694   :  { %v1958_v28 = vpop.trf.xlu0  ;;  %3113 = vmatprep.subr.bf16.mxu0 %v3264_v0 }
 0x695   :  { %v1974_v62 = vmax.f32 %v5247_v40, %v1958_v28 }
 0x697   :  { %v2006_v43 = vmul.f32 %v1990_v4, %v1974_v62  ;;  %v3138_v17 = vpack.c.bf16 %v1974_v62, %v1973_v8 }
 0x698   :  { %v1959_v11 = vpop.trf.xlu0  ;;  %v2162_v21 = vpop.xlane.xlu1 %2161 }
 0x699   :  { %v3114_v24 = vpack.c.bf16 %v2006_v43, %v2005_v34  ;;  %3139 = vmatpush3.bf16.msra.mxu1 %v3138_v17  ;;  %v1975_v6 = vmax.f32 %v5267_v55, %v1959_v11  ;;  %v2415_v36 = vsel %vm2414_vm7, %v2162_v21, 0.0 }
 0x69a   :  { %3140 = vmatprep.subr.bf16.mxu1 %v3264_v0 }
 0x69b   :  { %3115 = vmatpush3.bf16.msra.mxu0 %v3114_v24  ;;  %v2007_v41 = vmul.f32 %v1991_v63, %v1975_v6 }
 0x69c   :  { %v1960_v37 = vpop.trf.xlu0  ;;  %3116 = vmatprep.subr.bf16.mxu0 %v3264_v0 }
 0x69d   :  { %v1976_v40 = vmax.f32 %v5263_v16, %v1960_v37 }
 0x69f   :  { %v2008_v38 = vmul.f32 %v1992_v51, %v1976_v40  ;;  %v3141_v18 = vpack.c.bf16 %v1976_v40, %v1975_v6 }
 0x6a1   :  { %v3117_v45 = vpack.c.bf16 %v2008_v38, %v2007_v41  ;;  %3142 = vmatpush3.bf16.msra.mxu1 %v3141_v18 }
 0x6a3   :  { %3118 = vmatpush3.bf16.msra.mxu0 %v3117_v45 }
 0x6a4   :  { %2965 = vmatmul.mubr.f32.vlgmr.msra.gmra.mrb[4].mxu1 %v5351_v35 }
 0x6a6   :  { %2930 = vmatmul.mubr.f32.vlgmr.msra.gmra.mrb[18].mxu0 %v5351_v35 }
 0x6e5   :  { %v2261_v1 = vpop.f32.mrb[2].mxu1 }
 0x6e6   :  { %v2265_v55 = vsel %vm2159_vm0, %v2261_v1, 0.0  ;;  %v2896_v53 = vpop.f32.mrb[3].mxu1 }
 0x6e7   :  { %2266 = vadd.xlane.f32.xlu1 %v2265_v55 }
 0x774   :  { %v2267_v35 = vpop.xlane.xlu1 %2266 }
 0x775   :  { %v2417_v2 = vsel %vm2416_vm8, %v2267_v35, 0.0 }
 0x776   :  { %v2418_v3 = vadd.f32 %v2417_v2, %v2415_v36 }
 0x777   :  { %v2407_v19 = vpop.f32.mrb[4].mxu1 }
 0x778   :  { %v2966_v60 = vpop.f32.mrb[5].mxu1  ;;  %v2411_v50 = vsel %vm2159_vm0, %v2407_v19, 0.0 }
 0x779   :  { %v2334_v0 = vpop.f32.mrb[18].mxu0 }
 0x77a   :  { %v2338_v16 = vsel %vm2159_vm0, %v2334_v0, 0.0  ;;  %v2931_v23 = vpop.f32.mrb[19].mxu0 }
 0x77b   :  { %2339 = vadd.xlane.f32.xlu1 %v2338_v16 }
 0x77f   :  { %2412 = vadd.xlane.f32.xlu1 %v2411_v50 }
 0x808   :  { %v2340_v12 = vpop.xlane.xlu1 %2339 }
 0x809   :  { %v2420_v57 = vsel %vm2419_vm9, %v2340_v12, 0.0 }
 0x80a   :  { %v2421_v20 = vadd.f32 %v2420_v57, %v2418_v3 }
 0x80c   :  { %v2413_v27 = vpop.xlane.xlu1 %2412 }
 0x80d   :  { %v2423_v49 = vsel %vm2422_vm10, %v2413_v27, 0.0 }
 0x80e   :  { %v2424_v30 = vadd.f32 %v2423_v49, %v2421_v20 }
 0x810   :  { %2425 = vst [vmem:[#allocation8] sm:$0x1] %v2424_v30 }
 0x811   :  { %3243 = shalt.err (!%p3240_p6)
}
 0x812   :  { %s3244_s30 = scalar_lea.hbm %s5341_s5, 16 }
 0x813   :  { %p3245_p7 = scmp.ne.s32.totalorder %s5341_s5, %s3244_s30  ;;  %p3248_p8 = scmp.lt.u32.totalorder %s3244_s30, %s5341_s5 }
 0x815   :  { %p3250_p9 = pnand %p3248_p8, %p3245_p7 }
 0x817   :  { %3253 = shalt.err (!%p3250_p9)
}
 0x818   :  { %2435 = dma.vmem_to_hbm [thread:$0]  %s2433_s25, 16, %s5341_s5, [#allocation5]  }
 0x819   :  { %3258 = dma.done.wait [#allocation5], 16  }
 0x81a   :  { %3259 = vsyncadd [#allocation5], 4294967280 }
 0x81b   :  { %2439 = vsyncpa [#allocation4], 1 }
 0x81c   :  { %2440 = vsyncpa [#allocation7], 1 }
 0x81d   :  { %2441 = vsyncpa [#allocation5], 1 }

</bundles_post_ra>
